<compile_context>
chip_gen: v7x
topology: tpu7x:2x2x1
jax: 0.10.0
libtpu: 0.0.40
codegen_flags: <defaults>
</compile_context>

<pallas_src>
import jax
import jax.numpy as jnp
import numpy as np
from jax.experimental import pallas as pl
from jax.experimental.pallas import tpu as pltpu

_GATE_LANES = 128  # shift-gate logits padded to one full lane group


def _shift_linear_kernel(x_ref, prev_ref, w_ref, ws_ref, b_ref, expand_ref,
                         out_ref):
    # x_ref:      (1, TT, Din)     bf16 activation tile
    # prev_ref:   (1, 1, 1, Dout)  f32 projection of the previous-tile boundary
    #                              token (zero for the first tile)
    # w_ref:      (Din, Dout)      bf16 linear weight   (VMEM-resident)
    # ws_ref:     (Din, 128)       bf16 shift_proj weight, padded to 128 lanes
    # b_ref:      (1, Dout)        f32 bias
    # expand_ref: (128, Dout)      bf16 head-expansion (zero rows past H)
    # out_ref:    (1, TT, Dout)    result tile
    x = x_ref[0]                                                   # (TT, Din)

    # Linear projection + bias (full-K single MXU pass, f32 accumulation).
    out = jnp.dot(x, w_ref[...],
                  preferred_element_type=jnp.float32) + b_ref[...]  # (TT, Dout)

    # Shift gate: small 128-lane matmul, sigmoid in f32, then broadcast each
    # head over head_dim lanes with a bf16 MXU expansion matmul.
    gate = jnp.dot(x, ws_ref[...], preferred_element_type=jnp.float32)
    alpha = jnp.dot(jax.nn.sigmoid(gate).astype(jnp.bfloat16), expand_ref[...],
                    preferred_element_type=jnp.float32)             # (TT, Dout)

    # Token shift along T (sublane axis). Row 0 of `prev` wraps (garbage) and
    # is fixed below with a single-row store.
    prev = pltpu.roll(out, shift=1, axis=0)
    out_ref[0] = (alpha * prev + (1.0 - alpha) * out).astype(out_ref.dtype)

    # Row-0 fixup: the previous token of the first row of this tile lives in
    # prev_ref (zero for the very first tile of the sequence).
    prev0 = prev_ref[0, 0]                                           # (1, Dout)
    row0 = alpha[:1] * prev0 + (1.0 - alpha[:1]) * out[:1]
    out_ref[0, :1, :] = row0.astype(out_ref.dtype)


def _default_vmem_limit():
    try:
        cap = pltpu.get_tpu_info().vmem_capacity_bytes
    except Exception:
        cap = 64 * 1024 * 1024  # conservative (v7x-sized) fallback
    # ~7/8 of physical VMEM: ~56 MiB on v7x (64 MiB parts), 112 MiB on v5e/v6e.
    return min((cap * 7) // 8, 112 * 1024 * 1024)


def shift_linear(x, w, b, ws, num_heads, *, tt=None, vmem_limit_bytes=None):
    """ShiftLinear forward (T > 1 path).

    x:  (B, T, Din)    activations (streamed as bf16)
    w:  (Din, Dout)    linear weight (pre-transposed vs. nn.Linear)
    b:  (Dout,)        linear bias
    ws: (Din, H)       shift_proj weight (no bias), H == num_heads
    Returns (result (B, T, Dout), new_shift_state (B, Dout)) in x.dtype.
    """
    B, T, Din = x.shape
    Dout = w.shape[1]
    H = ws.shape[1]
    GP = _GATE_LANES
    assert H == num_heads and Dout % num_heads == 0
    assert H <= GP
    head_dim = Dout // num_heads
    # Lane-dense output stores require Dout to be a multiple of 128.
    assert Dout % 128 == 0, "pad output_dim to a multiple of 128"

    # T tile = weight-reuse factor per grid step. Default 512 (multiple of 256
    # keeps v6e/v7x MXU passes full); the test uses a small tt to exercise the
    # cross-tile token-shift boundary.
    tt = min(T, 512) if tt is None else tt
    assert T % tt == 0 and (tt == T or tt % 8 == 0)
    nt = T // tt

    if vmem_limit_bytes is None:
        vmem_limit_bytes = _default_vmem_limit()

    # bf16 weight/activation streams; f32 bias / gate math.
    xb = x.astype(jnp.bfloat16)
    wb = w.astype(jnp.bfloat16)
    wsb = jnp.pad(ws.astype(jnp.bfloat16), ((0, 0), (0, GP - H)))    # (Din, GP)
    b2d = b.reshape(1, Dout).astype(jnp.float32)
    # expand[h, h*head_dim:(h+1)*head_dim] = 1; zero rows for padded lanes.
    expandb = jnp.pad(
        jnp.repeat(jnp.eye(num_heads, dtype=jnp.float32), head_dim, axis=1),
        ((0, GP - num_heads), (0, 0))).astype(jnp.bfloat16)          # (GP, Dout)

    # Tiny XLA matmul over the T-tile boundary tokens: gives both
    # new_shift_state (= out[:, -1, :]) and the previous-token projection each
    # tile needs for its first row -> no serial carry, T axis fully parallel.
    boundary = xb[:, tt - 1::tt, :]                                   # (B, nt, Din)
    proj_boundary = (jnp.dot(boundary.reshape(B * nt, Din), wb,
                             preferred_element_type=jnp.float32)
                     .reshape(B, nt, Dout) + b.astype(jnp.float32))
    new_state = proj_boundary[:, -1, :].astype(x.dtype)               # (B, Dout)
    prev_rows = jnp.concatenate(
        [jnp.zeros((B, 1, Dout), jnp.float32), proj_boundary[:, :-1, :]],
        axis=1).reshape(B, nt, 1, Dout)

    out_itemsize = jnp.dtype(x.dtype).itemsize

    # Residency check: resident weights (+ worst-case double buffering) plus
    # streamed tiles must fit the scoped VMEM limit.
    const_bytes = Din * Dout * 2 + Din * GP * 2 + GP * Dout * 2 + Dout * 4
    stream_bytes = (2 * tt * Din * 2          # x tile (double-buffered)
                    + 2 * Dout * 4            # prev boundary row
                    + 2 * tt * Dout * out_itemsize)
    assert 2 * const_bytes + stream_bytes <= vmem_limit_bytes, (
        "weights do not fit resident in VMEM at this shape; "
        "TODO(synk): K-tiled fallback needed for very large Din*Dout")

    cost = pl.CostEstimate(
        flops=(2 * B * T * Din * Dout          # linear
               + 2 * B * T * Din * GP          # gate projection
               + 2 * B * T * GP * Dout),       # head expansion
        transcendentals=B * T * GP,
        bytes_accessed=(B * T * Din * 2        # x (bf16)
                        + Din * Dout * 2       # W (resident, read once)
                        + Din * GP * 2         # Ws
                        + GP * Dout * 2        # expand
                        + Dout * 4             # bias
                        + B * nt * Dout * 4    # boundary projections
                        + B * T * Dout * out_itemsize),
    )

    def _call(single_buffer_consts):
        def const_spec(shape, imap):
            if single_buffer_consts:
                return pl.BlockSpec(shape, imap, pipeline_mode=pl.Buffered(1))
            return pl.BlockSpec(shape, imap)

        return pl.pallas_call(
            _shift_linear_kernel,
            out_shape=jax.ShapeDtypeStruct((B, T, Dout), x.dtype),
            grid_spec=pltpu.PrefetchScalarGridSpec(
                num_scalar_prefetch=0,
                grid=(B, nt),
                in_specs=[
                    pl.BlockSpec((1, tt, Din), lambda bi, ti: (bi, ti, 0)),
                    pl.BlockSpec((1, 1, 1, Dout), lambda bi, ti: (bi, ti, 0, 0)),
                    const_spec((Din, Dout), lambda bi, ti: (0, 0)),
                    const_spec((Din, GP), lambda bi, ti: (0, 0)),
                    const_spec((1, Dout), lambda bi, ti: (0, 0)),
                    const_spec((GP, Dout), lambda bi, ti: (0, 0)),
                ],
                out_specs=pl.BlockSpec((1, tt, Dout), lambda bi, ti: (bi, ti, 0)),
            ),
            compiler_params=pltpu.CompilerParams(
                dimension_semantics=("parallel", "parallel"),
                vmem_limit_bytes=vmem_limit_bytes,
            ),
            cost_estimate=cost,
        )(xb, prev_rows, wb, wsb, b2d, expandb)

    try:
        result = _call(True)
    except Exception:
        # Older JAX without pipeline_mode=pl.Buffered(1): fall back to default
        # double-buffering for the constant-index operands.
        result = _call(False)

    return result, new_state


def reference(x, w, b, ws, num_heads):
    """Pure-JAX reference (f32 math on the same bf16-rounded inputs)."""
    B, T, _ = x.shape
    Dout = w.shape[1]
    d = Dout // num_heads
    f32 = jnp.float32
    out = jnp.einsum('btk,kn->btn', x.astype(f32), w.astype(f32),
                     precision=jax.lax.Precision.HIGHEST) + b.astype(f32)
    alpha = jax.nn.sigmoid(jnp.einsum('btk,kh->bth', x.astype(f32),
                                      ws.astype(f32),
                                      precision=jax.lax.Precision.HIGHEST))
    oph = out.reshape(B, T, num_heads, d)
    prev = jnp.concatenate([jnp.zeros_like(oph[:, :1]), oph[:, :-1]], axis=1)
    res = alpha[..., None] * prev + (1.0 - alpha[..., None]) * oph
    return res.reshape(B, T, Dout), out[:, -1, :]


if __name__ == "__main__":
    # Small shapes consistent with the module's (B, T, D) convention, chosen to
    # exercise T-tiling (2 tiles, cross-tile shift boundary) and lane-dense
    # Dout = 128.
    B, T = 2, 16
    input_dim, output_dim, num_heads = 256, 128, 4

    key = jax.random.PRNGKey(0)
    kx, kw, kb, ks = jax.random.split(key, 4)

    x = jax.random.normal(kx, (B, T, input_dim), dtype=jnp.float32).astype(jnp.bfloat16)
    # nn.Linear(input_dim, output_dim, bias=True): weight stored pre-transposed.
    w = (jax.random.normal(kw, (input_dim, output_dim), dtype=jnp.float32)
         / np.sqrt(input_dim)).astype(jnp.bfloat16)
    bias = jax.random.normal(kb, (output_dim,), dtype=jnp.float32) * 0.02
    # nn.Linear(input_dim, num_heads, bias=False): shift_bias=False.
    ws = (jax.random.normal(ks, (input_dim, num_heads), dtype=jnp.float32)
          / np.sqrt(input_dim)).astype(jnp.bfloat16)

    result, new_state = shift_linear(x, w, bias, ws, num_heads, tt=8)
    jax.block_until_ready((result, new_state))

    ref_result, ref_state = reference(x, w, bias, ws, num_heads)
    # Tolerances cover the bf16 activation/weight/alpha path (f32 accumulation).
    np.testing.assert_allclose(np.asarray(result, dtype=np.float32),
                               np.asarray(ref_result, dtype=np.float32),
                               rtol=2.5e-2, atol=4e-2)
    np.testing.assert_allclose(np.asarray(new_state, dtype=np.float32),
                               np.asarray(ref_state, dtype=np.float32),
                               rtol=2e-2, atol=2e-2)

    print("KERNEL_OK")
</pallas_src>

<mosaic_0001>
module attributes {stable_mosaic.version = 11 : i64} {
  func.func @_shift_linear_kernel(%arg0: i32, %arg1: i32, %arg2: memref<1x8x256xbf16, #tpu.memory_space<vmem>>, %arg3: memref<1x1x1x128xf32, #tpu.memory_space<vmem>>, %arg4: memref<256x128xbf16, #tpu.memory_space<vmem>>, %arg5: memref<256x128xbf16, #tpu.memory_space<vmem>>, %arg6: memref<1x128xf32, #tpu.memory_space<vmem>>, %arg7: memref<128x128xbf16, #tpu.memory_space<vmem>>, %arg8: memref<1x8x128xbf16, #tpu.memory_space<vmem>>) attributes {dimension_semantics = [#tpu.dimension_semantics<parallel>, #tpu.dimension_semantics<parallel>], iteration_bounds = array<i64: 2, 2>, scalar_prefetch = 0 : i64, scratch_operands = 0 : i64, tpu.core_type = #tpu.core_type<tc>, window_params = [{transform_indices = @transform_0, window_bounds = array<i64: 1, 8, 256>}, {transform_indices = @transform_1, window_bounds = array<i64: 1, 1, 1, 128>}, {pipeline_mode = #tpu.pipeline_mode<synchronous>, transform_indices = @transform_2, window_bounds = array<i64: 256, 128>}, {pipeline_mode = #tpu.pipeline_mode<synchronous>, transform_indices = @transform_3, window_bounds = array<i64: 256, 128>}, {pipeline_mode = #tpu.pipeline_mode<synchronous>, transform_indices = @transform_4, window_bounds = array<i64: 1, 128>}, {pipeline_mode = #tpu.pipeline_mode<synchronous>, transform_indices = @transform_5, window_bounds = array<i64: 128, 128>}, {transform_indices = @transform_6, window_bounds = array<i64: 1, 8, 128>}]} {
    %c0 = arith.constant 0 : index
    %c0_0 = arith.constant 0 : index
    %c0_1 = arith.constant 0 : index
    %0 = vector.load %arg2[%c0, %c0_0, %c0_1] : memref<1x8x256xbf16, #tpu.memory_space<vmem>>, vector<1x8x256xbf16>
    %1 = vector.shape_cast %0 : vector<1x8x256xbf16> to vector<8x256xbf16>
    %c0_2 = arith.constant 0 : index
    %c0_3 = arith.constant 0 : index
    %2 = vector.load %arg4[%c0_2, %c0_3] : memref<256x128xbf16, #tpu.memory_space<vmem>>, vector<256x128xbf16>
    %cst = arith.constant dense<0.000000e+00> : vector<8x128xf32>
    %3 = tpu.matmul %1, %2, %cst {dimension_numbers = #tpu.dot_dimension_numbers<[1], [0], [0], [1], [0, 0, 1, 1], [], []>} : vector<8x256xbf16>, vector<256x128xbf16>, vector<8x128xf32> -> vector<8x128xf32>
    %c0_4 = arith.constant 0 : index
    %c0_5 = arith.constant 0 : index
    %4 = vector.load %arg6[%c0_4, %c0_5] : memref<1x128xf32, #tpu.memory_space<vmem>>, vector<1x128xf32>
    %5 = vector.broadcast %4 : vector<1x128xf32> to vector<8x128xf32>
    %6 = arith.addf %3, %5 : vector<8x128xf32>
    %c0_6 = arith.constant 0 : index
    %c0_7 = arith.constant 0 : index
    %7 = vector.load %arg5[%c0_6, %c0_7] : memref<256x128xbf16, #tpu.memory_space<vmem>>, vector<256x128xbf16>
    %cst_8 = arith.constant dense<0.000000e+00> : vector<8x128xf32>
    %8 = tpu.matmul %1, %7, %cst_8 {dimension_numbers = #tpu.dot_dimension_numbers<[1], [0], [0], [1], [0, 0, 1, 1], [], []>} : vector<8x256xbf16>, vector<256x128xbf16>, vector<8x128xf32> -> vector<8x128xf32>
    %9 = arith.negf %8 : vector<8x128xf32>
    %10 = math.exp %9 : vector<8x128xf32>
    %cst_9 = arith.constant 1.000000e+00 : f32
    %11 = vector.broadcast %cst_9 : f32 to vector<8x128xf32>
    %12 = arith.addf %11, %10 : vector<8x128xf32>
    %13 = arith.divf %11, %12 : vector<8x128xf32>
    %14 = arith.truncf %13 : vector<8x128xf32> to vector<8x128xbf16>
    %c0_10 = arith.constant 0 : index
    %c0_11 = arith.constant 0 : index
    %15 = vector.load %arg7[%c0_10, %c0_11] : memref<128x128xbf16, #tpu.memory_space<vmem>>, vector<128x128xbf16>
    %cst_12 = arith.constant dense<0.000000e+00> : vector<8x128xf32>
    %16 = tpu.matmul %14, %15, %cst_12 {dimension_numbers = #tpu.dot_dimension_numbers<[1], [0], [0], [1], [0, 0, 1, 1], [], []>} : vector<8x128xbf16>, vector<128x128xbf16>, vector<8x128xf32> -> vector<8x128xf32>
    %c1_i32 = arith.constant 1 : i32
    %17 = tpu.dynamic_rotate %6 by %c1_i32 dim 0 : vector<8x128xf32>, i32 -> vector<8x128xf32>
    %18 = arith.mulf %16, %17 : vector<8x128xf32>
    %cst_13 = arith.constant 1.000000e+00 : f32
    %19 = vector.broadcast %cst_13 : f32 to vector<8x128xf32>
    %20 = arith.subf %19, %16 : vector<8x128xf32>
    %21 = arith.mulf %20, %6 : vector<8x128xf32>
    %22 = arith.addf %18, %21 : vector<8x128xf32>
    %23 = arith.truncf %22 : vector<8x128xf32> to vector<8x128xbf16>
    %c0_14 = arith.constant 0 : index
    %c0_15 = arith.constant 0 : index
    %c0_16 = arith.constant 0 : index
    %24 = vector.load %arg8[%c0_14, %c0_15, %c0_16] : memref<1x8x128xbf16, #tpu.memory_space<vmem>>, vector<1x8x128xbf16>
    %25 = vector.shape_cast %24 : vector<1x8x128xbf16> to vector<8x128xbf16>
    %26 = vector.shape_cast %23 : vector<8x128xbf16> to vector<1x8x128xbf16>
    tpu.vector_store %arg8[%c0_14, %c0_15, %c0_16], %26 {strides = array<i32>} : memref<1x8x128xbf16, #tpu.memory_space<vmem>>, vector<1x8x128xbf16>,
    %c0_17 = arith.constant 0 : index
    %c0_18 = arith.constant 0 : index
    %c0_19 = arith.constant 0 : index
    %c0_20 = arith.constant 0 : index
    %27 = vector.load %arg3[%c0_17, %c0_18, %c0_19, %c0_20] : memref<1x1x1x128xf32, #tpu.memory_space<vmem>>, vector<1x1x1x128xf32>
    %28 = vector.shape_cast %27 : vector<1x1x1x128xf32> to vector<1x128xf32>
    %29 = vector.extract_strided_slice %16 {offsets = [0, 0], sizes = [1, 128], strides = [1, 1]} : vector<8x128xf32> to vector<1x128xf32>
    %30 = arith.mulf %29, %28 : vector<1x128xf32>
    %31 = vector.extract_strided_slice %16 {offsets = [0, 0], sizes = [1, 128], strides = [1, 1]} : vector<8x128xf32> to vector<1x128xf32>
    %cst_21 = arith.constant 1.000000e+00 : f32
    %32 = vector.broadcast %cst_21 : f32 to vector<1x128xf32>
    %33 = arith.subf %32, %31 : vector<1x128xf32>
    %34 = vector.extract_strided_slice %6 {offsets = [0, 0], sizes = [1, 128], strides = [1, 1]} : vector<8x128xf32> to vector<1x128xf32>
    %35 = arith.mulf %33, %34 : vector<1x128xf32>
    %36 = arith.addf %30, %35 : vector<1x128xf32>
    %37 = arith.truncf %36 : vector<1x128xf32> to vector<1x128xbf16>
    %c0_22 = arith.constant 0 : index
    %c0_23 = arith.constant 0 : index
    %c0_24 = arith.constant 0 : index
    %38 = vector.load %arg8[%c0_22, %c0_23, %c0_24] : memref<1x8x128xbf16, #tpu.memory_space<vmem>>, vector<1x1x128xbf16>
    %39 = vector.shape_cast %38 : vector<1x1x128xbf16> to vector<1x128xbf16>
    %40 = vector.shape_cast %37 : vector<1x128xbf16> to vector<1x1x128xbf16>
    tpu.vector_store %arg8[%c0_22, %c0_23, %c0_24], %40 {strides = array<i32>} : memref<1x8x128xbf16, #tpu.memory_space<vmem>>, vector<1x1x128xbf16>,
    return
  }
  func.func @transform_0(%arg0: i32, %arg1: i32) -> (i32, i32, i32) {
    %c0_i32 = arith.constant 0 : i32
    %c0_i32_0 = arith.constant 0 : i32
    return %arg0, %arg1, %c0_i32 : i32, i32, i32
  }
  func.func @transform_1(%arg0: i32, %arg1: i32) -> (i32, i32, i32, i32) {
    %c0_i32 = arith.constant 0 : i32
    %c0_i32_0 = arith.constant 0 : i32
    %c0_i32_1 = arith.constant 0 : i32
    return %arg0, %arg1, %c0_i32, %c0_i32_0 : i32, i32, i32, i32
  }
  func.func @transform_2(%arg0: i32, %arg1: i32) -> (i32, i32) {
    %c0_i32 = arith.constant 0 : i32
    %c0_i32_0 = arith.constant 0 : i32
    %c0_i32_1 = arith.constant 0 : i32
    return %c0_i32, %c0_i32_0 : i32, i32
  }
  func.func @transform_3(%arg0: i32, %arg1: i32) -> (i32, i32) {
    %c0_i32 = arith.constant 0 : i32
    %c0_i32_0 = arith.constant 0 : i32
    %c0_i32_1 = arith.constant 0 : i32
    return %c0_i32, %c0_i32_0 : i32, i32
  }
  func.func @transform_4(%arg0: i32, %arg1: i32) -> (i32, i32) {
    %c0_i32 = arith.constant 0 : i32
    %c0_i32_0 = arith.constant 0 : i32
    %c0_i32_1 = arith.constant 0 : i32
    return %c0_i32, %c0_i32_0 : i32, i32
  }
  func.func @transform_5(%arg0: i32, %arg1: i32) -> (i32, i32) {
    %c0_i32 = arith.constant 0 : i32
    %c0_i32_0 = arith.constant 0 : i32
    %c0_i32_1 = arith.constant 0 : i32
    return %c0_i32, %c0_i32_0 : i32, i32
  }
  func.func @transform_6(%arg0: i32, %arg1: i32) -> (i32, i32, i32) {
    %c0_i32 = arith.constant 0 : i32
    %c0_i32_0 = arith.constant 0 : i32
    return %arg0, %arg1, %c0_i32 : i32, i32, i32
  }
}

module attributes {stable_mosaic.version = 11 : i64} {
  func.func @_shift_linear_kernel(%arg0: i32, %arg1: i32, %arg2: memref<1x8x256xbf16, #tpu.memory_space<vmem>>, %arg3: memref<1x1x1x128xf32, #tpu.memory_space<vmem>>, %arg4: memref<256x128xbf16, #tpu.memory_space<vmem>>, %arg5: memref<256x128xbf16, #tpu.memory_space<vmem>>, %arg6: memref<1x128xf32, #tpu.memory_space<vmem>>, %arg7: memref<128x128xbf16, #tpu.memory_space<vmem>>, %arg8: memref<1x8x128xbf16, #tpu.memory_space<vmem>>) attributes {dimension_semantics = [#tpu.dimension_semantics<parallel>, #tpu.dimension_semantics<parallel>], iteration_bounds = array<i64: 2, 2>, scalar_prefetch = 0 : i64, scratch_operands = 0 : i64, tpu.core_type = #tpu.core_type<tc>, window_params = [{transform_indices = @transform_0, window_bounds = array<i64: 1, 8, 256>}, {transform_indices = @transform_1, window_bounds = array<i64: 1, 1, 1, 128>}, {pipeline_mode = #tpu.pipeline_mode<synchronous>, transform_indices = @transform_2, window_bounds = array<i64: 256, 128>}, {pipeline_mode = #tpu.pipeline_mode<synchronous>, transform_indices = @transform_3, window_bounds = array<i64: 256, 128>}, {pipeline_mode = #tpu.pipeline_mode<synchronous>, transform_indices = @transform_4, window_bounds = array<i64: 1, 128>}, {pipeline_mode = #tpu.pipeline_mode<synchronous>, transform_indices = @transform_5, window_bounds = array<i64: 128, 128>}, {transform_indices = @transform_6, window_bounds = array<i64: 1, 8, 128>}]} {
    %c0 = arith.constant 0 : index
    %c0_0 = arith.constant 0 : index
    %c0_1 = arith.constant 0 : index
    %0 = vector.load %arg2[%c0, %c0_0, %c0_1] : memref<1x8x256xbf16, #tpu.memory_space<vmem>>, vector<1x8x256xbf16>
    %1 = vector.shape_cast %0 : vector<1x8x256xbf16> to vector<8x256xbf16>
    %c0_2 = arith.constant 0 : index
    %c0_3 = arith.constant 0 : index
    %2 = vector.load %arg4[%c0_2, %c0_3] : memref<256x128xbf16, #tpu.memory_space<vmem>>, vector<256x128xbf16>
    %cst = arith.constant dense<0.000000e+00> : vector<8x128xf32>
    %3 = tpu.matmul %1, %2, %cst {dimension_numbers = #tpu.dot_dimension_numbers<[1], [0], [0], [1], [0, 0, 1, 1], [], []>} : vector<8x256xbf16>, vector<256x128xbf16>, vector<8x128xf32> -> vector<8x128xf32>
    %c0_4 = arith.constant 0 : index
    %c0_5 = arith.constant 0 : index
    %4 = vector.load %arg6[%c0_4, %c0_5] : memref<1x128xf32, #tpu.memory_space<vmem>>, vector<1x128xf32>
    %5 = vector.broadcast %4 : vector<1x128xf32> to vector<8x128xf32>
    %6 = arith.addf %3, %5 : vector<8x128xf32>
    %c0_6 = arith.constant 0 : index
    %c0_7 = arith.constant 0 : index
    %7 = vector.load %arg5[%c0_6, %c0_7] : memref<256x128xbf16, #tpu.memory_space<vmem>>, vector<256x128xbf16>
    %cst_8 = arith.constant dense<0.000000e+00> : vector<8x128xf32>
    %8 = tpu.matmul %1, %7, %cst_8 {dimension_numbers = #tpu.dot_dimension_numbers<[1], [0], [0], [1], [0, 0, 1, 1], [], []>} : vector<8x256xbf16>, vector<256x128xbf16>, vector<8x128xf32> -> vector<8x128xf32>
    %9 = arith.negf %8 : vector<8x128xf32>
    %10 = math.exp %9 : vector<8x128xf32>
    %cst_9 = arith.constant 1.000000e+00 : f32
    %11 = vector.broadcast %cst_9 : f32 to vector<8x128xf32>
    %12 = arith.addf %11, %10 : vector<8x128xf32>
    %13 = arith.divf %11, %12 : vector<8x128xf32>
    %14 = arith.truncf %13 : vector<8x128xf32> to vector<8x128xbf16>
    %c0_10 = arith.constant 0 : index
    %c0_11 = arith.constant 0 : index
    %15 = vector.load %arg7[%c0_10, %c0_11] : memref<128x128xbf16, #tpu.memory_space<vmem>>, vector<128x128xbf16>
    %cst_12 = arith.constant dense<0.000000e+00> : vector<8x128xf32>
    %16 = tpu.matmul %14, %15, %cst_12 {dimension_numbers = #tpu.dot_dimension_numbers<[1], [0], [0], [1], [0, 0, 1, 1], [], []>} : vector<8x128xbf16>, vector<128x128xbf16>, vector<8x128xf32> -> vector<8x128xf32>
    %c1_i32 = arith.constant 1 : i32
    %17 = tpu.dynamic_rotate %6 by %c1_i32 dim 0 : vector<8x128xf32>, i32 -> vector<8x128xf32>
    %18 = arith.mulf %16, %17 : vector<8x128xf32>
    %cst_13 = arith.constant 1.000000e+00 : f32
    %19 = vector.broadcast %cst_13 : f32 to vector<8x128xf32>
    %20 = arith.subf %19, %16 : vector<8x128xf32>
    %21 = arith.mulf %20, %6 : vector<8x128xf32>
    %22 = arith.addf %18, %21 : vector<8x128xf32>
    %23 = arith.truncf %22 : vector<8x128xf32> to vector<8x128xbf16>
    %c0_14 = arith.constant 0 : index
    %c0_15 = arith.constant 0 : index
    %c0_16 = arith.constant 0 : index
    %24 = vector.load %arg8[%c0_14, %c0_15, %c0_16] : memref<1x8x128xbf16, #tpu.memory_space<vmem>>, vector<1x8x128xbf16>
    %25 = vector.shape_cast %24 : vector<1x8x128xbf16> to vector<8x128xbf16>
    %26 = vector.shape_cast %23 : vector<8x128xbf16> to vector<1x8x128xbf16>
    tpu.vector_store %arg8[%c0_14, %c0_15, %c0_16], %26 {strides = array<i32>} : memref<1x8x128xbf16, #tpu.memory_space<vmem>>, vector<1x8x128xbf16>,
    %c0_17 = arith.constant 0 : index
    %c0_18 = arith.constant 0 : index
    %c0_19 = arith.constant 0 : index
    %c0_20 = arith.constant 0 : index
    %27 = vector.load %arg3[%c0_17, %c0_18, %c0_19, %c0_20] : memref<1x1x1x128xf32, #tpu.memory_space<vmem>>, vector<1x1x1x128xf32>
    %28 = vector.shape_cast %27 : vector<1x1x1x128xf32> to vector<1x128xf32>
    %29 = vector.extract_strided_slice %16 {offsets = [0, 0], sizes = [1, 128], strides = [1, 1]} : vector<8x128xf32> to vector<1x128xf32>
    %30 = arith.mulf %29, %28 : vector<1x128xf32>
    %31 = vector.extract_strided_slice %16 {offsets = [0, 0], sizes = [1, 128], strides = [1, 1]} : vector<8x128xf32> to vector<1x128xf32>
    %cst_21 = arith.constant 1.000000e+00 : f32
    %32 = vector.broadcast %cst_21 : f32 to vector<1x128xf32>
    %33 = arith.subf %32, %31 : vector<1x128xf32>
    %34 = vector.extract_strided_slice %6 {offsets = [0, 0], sizes = [1, 128], strides = [1, 1]} : vector<8x128xf32> to vector<1x128xf32>
    %35 = arith.mulf %33, %34 : vector<1x128xf32>
    %36 = arith.addf %30, %35 : vector<1x128xf32>
    %37 = arith.truncf %36 : vector<1x128xf32> to vector<1x128xbf16>
    %c0_22 = arith.constant 0 : index
    %c0_23 = arith.constant 0 : index
    %c0_24 = arith.constant 0 : index
    %38 = vector.load %arg8[%c0_22, %c0_23, %c0_24] : memref<1x8x128xbf16, #tpu.memory_space<vmem>>, vector<1x1x128xbf16>
    %39 = vector.shape_cast %38 : vector<1x1x128xbf16> to vector<1x128xbf16>
    %40 = vector.shape_cast %37 : vector<1x128xbf16> to vector<1x1x128xbf16>
    tpu.vector_store %arg8[%c0_22, %c0_23, %c0_24], %40 {strides = array<i32>} : memref<1x8x128xbf16, #tpu.memory_space<vmem>>, vector<1x1x128xbf16>,
    return
  }
  func.func @transform_0(%arg0: i32, %arg1: i32) -> (i32, i32, i32) {
    %c0_i32 = arith.constant 0 : i32
    %c0_i32_0 = arith.constant 0 : i32
    return %arg0, %arg1, %c0_i32 : i32, i32, i32
  }
  func.func @transform_1(%arg0: i32, %arg1: i32) -> (i32, i32, i32, i32) {
    %c0_i32 = arith.constant 0 : i32
    %c0_i32_0 = arith.constant 0 : i32
    %c0_i32_1 = arith.constant 0 : i32
    return %arg0, %arg1, %c0_i32, %c0_i32_0 : i32, i32, i32, i32
  }
  func.func @transform_2(%arg0: i32, %arg1: i32) -> (i32, i32) {
    %c0_i32 = arith.constant 0 : i32
    %c0_i32_0 = arith.constant 0 : i32
    %c0_i32_1 = arith.constant 0 : i32
    return %c0_i32, %c0_i32_0 : i32, i32
  }
  func.func @transform_3(%arg0: i32, %arg1: i32) -> (i32, i32) {
    %c0_i32 = arith.constant 0 : i32
    %c0_i32_0 = arith.constant 0 : i32
    %c0_i32_1 = arith.constant 0 : i32
    return %c0_i32, %c0_i32_0 : i32, i32
  }
  func.func @transform_4(%arg0: i32, %arg1: i32) -> (i32, i32) {
    %c0_i32 = arith.constant 0 : i32
    %c0_i32_0 = arith.constant 0 : i32
    %c0_i32_1 = arith.constant 0 : i32
    return %c0_i32, %c0_i32_0 : i32, i32
  }
  func.func @transform_5(%arg0: i32, %arg1: i32) -> (i32, i32) {
    %c0_i32 = arith.constant 0 : i32
    %c0_i32_0 = arith.constant 0 : i32
    %c0_i32_1 = arith.constant 0 : i32
    return %c0_i32, %c0_i32_0 : i32, i32
  }
  func.func @transform_6(%arg0: i32, %arg1: i32) -> (i32, i32, i32) {
    %c0_i32 = arith.constant 0 : i32
    %c0_i32_0 = arith.constant 0 : i32
    return %arg0, %arg1, %c0_i32 : i32, i32, i32
  }
}

</mosaic_0001>

<bundles_post_ra>
// kernel: tpu_custom_call.1
= control target key start
LH: loop header
LB: loop body
LE: loop exit
PB: predicated region body
PF: predicated region fallthrough
CT: control target
= control target key end

     0   :  { %s1961_s0 = inlined_call_operand.hbm [shape: bf16[2,16,256], index: 0, kind: input, shape index: {}]   ;;  %s1962_s1 = inlined_call_operand.hbm [shape: f32[2,2,1,128], index: 1, kind: input, shape index: {}]   ;;  %s1963_s2 = inlined_call_operand.hbm [shape: bf16[256,128], index: 2, kind: input, shape index: {}]   ;;  %s1964_s3 = inlined_call_operand.hbm [shape: bf16[256,128], index: 3, kind: input, shape index: {}]   ;;  %s1965_s4 = inlined_call_operand.vmem [shape: f32[1,128], index: 4, kind: input, shape index: {}]   ;;  %s1966_s5 = inlined_call_operand.hbm [shape: bf16[128,128], index: 5, kind: input, shape index: {}]   ;;  %s1967_s6 = inlined_call_operand.hbm [shape: bf16[2,16,128], index: 6, kind: output, shape index: {}]  }
   0x1   :  { %1975 = sst [smem:[#allocation21_spill]] %s1963_s2 }
   0x2   :  { %1976 = sst [smem:[#allocation22_spill]] %s1964_s3 }
   0x3   :  { %1977 = sst [smem:[#allocation23_spill]] %s1966_s5 }
   0x4   :  { %1978 = sst [smem:[#allocation24_spill]] %s1967_s6 }
   0x5   :  { %11 = vsyncpa [#allocation3], 0 }
   0x6   :  { %13 = vsyncpa [#allocation3 + $0x1], 0 }
   0x7   :  { %14 = vsyncpa [#allocation6], 0 }
   0x8   :  { %16 = vsyncpa [#allocation6 + $0x1], 0 }
   0x9   :  { %17 = vsyncpa [#allocation9], 0 }
   0xa   :  { %18 = vsyncpa [#allocation4], 0 }
   0xb   :  { %20 = vsyncpa [#allocation4 + $0x1], 0  ;;  %s1605_s21 = smov 0   ;;  %s1607_s22 = smov 0  }
   0xc   :  { %s1609_s23 = smov 0   ;;  %s1611_s24 = smov 0  }
   0xd   :  { %s1613_s25 = smov 0   ;;  %s1615_s26 = smov 0  }
   0xe   :  { %s1617_s27 = smov 0   ;;  %s1619_s28 = smov 0  }
   0xf LB: > { %1979 = sst [smem:[#allocation17_spill]] %s1530_s21  ;;  %s1646_s29 = sadd.s32 4294967295, %s1558_s28   ;;  %s1558_s28 = sphi %s1619_s28, %s26_s28   ;;  %s1554_s27 = sphi %s1617_s27, %s2013_s27   ;;  %s1550_s26 = sphi %s1615_s26, %s2012_s26   ;;  %s1546_s25 = sphi %s1613_s25, %s2011_s25   ;;  %s1542_s24 = sphi %s1611_s24, %s2010_s24   ;;  %s1538_s23 = sphi %s1609_s23, %s2009_s23   ;;  %s1534_s22 = sphi %s1607_s22, %s2008_s22   ;;  %s1530_s21 = sphi %s1605_s21, %s2007_s21  }
  0x10   : > { %1980 = sst [smem:[#allocation18_spill]] %s1542_s24  ;;  %s1000_s30 = sadd.s32 4294967294, %s1558_s28  }
  0x11   : > { %p60_p0 = scmp.ne.s32.totalorder %s1534_s22, %s1530_s21  ;;  %p1968_p1 = scmp.eq.s32.totalorder %s1646_s29, 0 }
  0x12   : > { %p204_p3 = scmp.eq.s32.totalorder %s1000_s30, 3  ;;  %p1001_p5 = scmp.ge.s32.totalorder %s1558_s28, 1 }
  0x13   : > { %p1655_p4 = por %p1968_p1, %p60_p0  ;;  %p211_p7 = scmp.lt.s32.totalorder %s1558_s28, 5 }
  0x14   : > { %p1660_p6 = por %p204_p3, %p60_p0  ;;  %s1560_s10 = smov [#allocation7]  }
  0x15   : > { %s1981_s7 = scalar_select %p1655_p4, 1, 0 }
  0x16   : > { %s1982_s8 = scalar_select %p1660_p6, 1, 0 }
  0x17   : > { %p1665_p8 = pnand %p1001_p5, %p211_p7  ;;  %s223_s11 = sshll.u32 %s1560_s10, 4  ;;  %s1669_s11 = int_to_ptr.vmem [resolvable:$true] %s223_s11 }
  0x18   : > { %1983 = sst [smem:[#allocation19_spill]] %s1982_s8  ;;  %s1561_s13 = smov [#allocation8]  }
  0x19   : > { %s1984_s9 = scalar_select %p1665_p8, 1, 0 }
  0x1a   : > { %p1158_p9 = pneg %p1665_p8  ;;  %s236_s14 = sshll.u32 %s1561_s13, 4  ;;  %s1679_s14 = int_to_ptr.vmem [resolvable:$true] %s236_s14 }
  0x1b   : > { %s1562_s15 = smov [#allocation10]   ;;  %s1986_s2 = sld [smem:[#allocation21_spill]] }
  0x1c   : > { %p1675_p10 = pnand %p1158_p9, %p1968_p1  ;;  %s1681_s16 = sshll.u32 %s1562_s15, 4  ;;  %s253_s16 = int_to_ptr.vmem [resolvable:$true] %s1681_s16 }
  0x1e   : > { %p1691_p12 = pneg %p1675_p10 }
  0x21   : > { %s1304_s19 = scalar_lea.hbm %s1986_s2, 2048 }
  0x22   : > { %p1305_p11 = scmp.ne.s32.totalorder %s1986_s2, %s1304_s19  ;;  %p1311_p3 = scmp.lt.u32.totalorder %s1304_s19, %s1986_s2 }
  0x24   : > { %p1307_p13 = pnand %p1691_p12, %p1305_p11 }
  0x26   : > { %p1308_p0 = pneg %p1307_p13 }
  0x28   : > { %p1313_p5 = pnand %p1311_p3, %p1308_p0 }
  0x2a   : > { %1316 = shalt.err (!%p1313_p5)
}
  0x2b   : > { %s1317_s17 = scalar_lea.vmem %s1669_s11, 2048  ;;  %p1325_p2 = scmp.lt.s32.totalorder %s1669_s11, %s1669_s11 }
  0x2c   : > { %p1318_p7 = scmp.ne.s32.totalorder %s1669_s11, %s1317_s17  ;;  %p1326_p6 = scmp.lt.s32.totalorder %s1317_s17, %s1317_s17 }
  0x2e   : > { %p1320_p9 = pnand %p1318_p7, %p1691_p12  ;;  %p1327_p11 = por %p1326_p6, %p1325_p2 }
  0x30   : > { %p1321_p1 = pneg %p1320_p9 }
  0x32   : > { %p1328_p13 = pnand %p1327_p11, %p1321_p1 }
  0x34   : > { %1331 = shalt.err (!%p1328_p13)
}
  0x35   : > { %s1563_s18 = smov 64   ;;  %s1564_s19 = smov 4  }
  0x36   : > { %1161 = dma.hbm_to_vmem [thread:$0]  (!%p1675_p10), %s1986_s2, 2048, %s1669_s11, [#allocation6], %s1563_s18, %s1563_s18, %s1564_s19  }
  0x37   : > { %s1988_s3 = sld [smem:[#allocation22_spill]] }
  0x3d   : > { %s1332_s17 = scalar_lea.hbm %s1988_s3, 2048 }
  0x3e   : > { %p1333_p1 = scmp.ne.s32.totalorder %s1988_s3, %s1332_s17  ;;  %p1339_p0 = scmp.lt.u32.totalorder %s1332_s17, %s1988_s3 }
  0x40   : > { %p1335_p2 = pnand %p1333_p1, %p1691_p12 }
  0x42   : > { %p1336_p6 = pneg %p1335_p2 }
  0x44   : > { %p1341_p3 = pnand %p1339_p0, %p1336_p6 }
  0x46   : > { %1344 = shalt.err (!%p1341_p3)
}
  0x47   : > { %s1345_s11 = scalar_lea.vmem %s1679_s14, 2048  ;;  %p1353_p11 = scmp.lt.s32.totalorder %s1679_s14, %s1679_s14 }
  0x48   : > { %p1346_p5 = scmp.ne.s32.totalorder %s1679_s14, %s1345_s11  ;;  %p1354_p13 = scmp.lt.s32.totalorder %s1345_s11, %s1345_s11 }
  0x4a   : > { %p1348_p7 = pnand %p1346_p5, %p1691_p12  ;;  %p1355_p1 = por %p1354_p13, %p1353_p11 }
  0x4c   : > { %p1349_p9 = pneg %p1348_p7 }
  0x4e   : > { %p1356_p2 = pnand %p1355_p1, %p1349_p9 }
  0x50   : > { %1359 = shalt.err (!%p1356_p2)
}
  0x51   : > { %1164 = dma.hbm_to_vmem [thread:$0]  (!%p1675_p10), %s1988_s3, 2048, %s1679_s14, [#allocation9], %s1563_s18, %s1563_s18, %s1564_s19  }
  0x52   : > { %s1989_s5 = sld [smem:[#allocation23_spill]] }
  0x58   : > { %s1360_s20 = scalar_lea.hbm %s1989_s5, 1024 }
  0x59   : > { %p1361_p6 = scmp.ne.s32.totalorder %s1989_s5, %s1360_s20  ;;  %p1367_p5 = scmp.lt.u32.totalorder %s1360_s20, %s1989_s5 }
  0x5b   : > { %p1363_p0 = pnand %p1361_p6, %p1691_p12 }
  0x5d   : > { %p1364_p3 = pneg %p1363_p0 }
  0x5f   : > { %p1369_p7 = pnand %p1367_p5, %p1364_p3 }
  0x61   : > { %1372 = shalt.err (!%p1369_p7)
}
  0x62   : > { %s1373_s11 = scalar_lea.vmem %s253_s16, 1024  ;;  %p1381_p1 = scmp.lt.s32.totalorder %s253_s16, %s253_s16 }
  0x63   : > { %p1374_p9 = scmp.ne.s32.totalorder %s253_s16, %s1373_s11  ;;  %p1382_p2 = scmp.lt.s32.totalorder %s1373_s11, %s1373_s11 }
  0x65   : > { %p1376_p11 = pnand %p1374_p9, %p1691_p12  ;;  %p1383_p4 = por %p1382_p2, %p1381_p1 }
  0x67   : > { %p1377_p13 = pneg %p1376_p11 }
  0x69   : > { %p1384_p8 = pnand %p1383_p4, %p1377_p13 }
  0x6b   : > { %1387 = shalt.err (!%p1384_p8)
}
  0x6c   : > { %1167 = dma.hbm_to_vmem [thread:$0]  (!%p1675_p10), %s1989_s5, 1024, %s253_s16, [#allocation9], %s1563_s18, %s1563_s18, %s1564_s19  }
  0x6d   : > { %s35_s12 = sadd.s32 1, %s1550_s26  ;;  %s38_s10 = sadd.s32 1, %s1554_s27 }
  0x6e   : > { %p36_p4 = scmp.ge.s32.totalorder %s35_s12, 2  ;;  %s47_s21 = sadd.s32 1, %s1538_s23 }
  0x6f   : > { %p54_p8 = scmp.ne.s32.totalorder %s1538_s23, %s1534_s22  ;;  %p55_p12 = scmp.eq.s32.totalorder %s1558_s28, 0 }
  0x70   : > { %s2015_s12 = smov (%p36_p4, %s35_s12), 0  ;;  %s2017_s10 = smov (!%p36_p4, %s38_s10), %s1554_s27 }
  0x71   : > { %s43_s24 = ssub.s32 %s1550_s26, %s2015_s12  ;;  %p40_p6 = scmp.ge.s32.totalorder %s2017_s10, 2 }
  0x72   : > { %p1990_p0 = scmp.eq.s32.totalorder %s1646_s29, 3  ;;  %p1780_p10 = por %p55_p12, %p54_p8 }
  0x73   : > { %p1182_p5 = scmp.lt.s32.totalorder %s1558_s28, 4  ;;  %s2019_s10 = smov (%p40_p6, %s2017_s10), 0 }
  0x74   : > { %p1776_p3 = por %p1990_p0, %p54_p8  ;;  %1993 = sst [smem:[#allocation20_spill]] %s2019_s10 }
  0x75   : > { %s1788_s18 = sand.u32 1, %s1538_s23   ;;  %s1007_s19 = sshll.u32 %s1550_s26, 1 }
  0x76   : > { %s42_s20 = ssub.s32 %s1554_s27, %s2019_s10  ;;  %s1006_s13 = sshll.u32 %s1788_s18, 3 }
  0x77   : > { %s44_s30 = sor.u32 %s43_s24, %s42_s20  ;;  %s1008_s15 = sshll.u32 %s1554_s27, 2 }
  0x78   : > { %p45_p7 = scmp.eq.s32.totalorder %s44_s30, 0  ;;  %s270_s17 = scalar_lea.vmem [#allocation2], %s1006_s13 }
  0x79   : > { %s280_s11 = sshll.u32 %s270_s17, 4  ;;  %s276_s6 = sadd.s32 %s1008_s15, %s1007_s19  ;;  %s1798_s11 = int_to_ptr.vmem [resolvable:$true] %s280_s11 }
  0x7a   : > { %s1796_s14 = scalar_select %p45_p7, %s1538_s23, %s47_s21  }
  0x7b   : > { %s1009_s2 = sshll.u32 %s276_s6, 6  ;;  %p1804_p9 = pnand %p1182_p5, %p1780_p10 }
  0x7c   : > { %s1811_s24 = scalar_lea.hbm %s1961_s0, %s1009_s2  ;;  %s287_s21 = sand.u32 1, %s1558_s28  }
  0x7d   : > { %s267_s19 = scalar_lea.sflag [#allocation3], %s1788_s18  ;;  %s1388_s20 = scalar_lea.hbm %s1811_s24, 128 }
  0x7e   : > { %p1389_p11 = scmp.ne.s32.totalorder %s1811_s24, %s1388_s20  ;;  %p1390_p13 = pneg %p1804_p9 }
  0x7f   : > { %s1393_s10 = scalar_lea.hbm %s1961_s0, 512  ;;  %p1394_p4 = scmp.lt.u32.totalorder %s1811_s24, %s1961_s0 }
  0x80   : > { %p1391_p1 = pnand %p1390_p13, %p1389_p11  ;;  %p1395_p8 = scmp.lt.u32.totalorder %s1393_s10, %s1388_s20 }
  0x81   : > { %p1397_p6 = scmp.lt.u32.totalorder %s1388_s20, %s1811_s24 }
  0x82   : > { %p1392_p2 = pneg %p1391_p1  ;;  %p1396_p12 = por %p1395_p8, %p1394_p4 }
  0x84   : > { %p1398_p0 = por %p1397_p6, %p1396_p12 }
  0x86   : > { %p1399_p10 = pnand %p1398_p0, %p1392_p2 }
  0x88   : > { %1402 = shalt.err (!%p1399_p10)
}
  0x89   : > { %s1403_s13 = scalar_lea.vmem %s1798_s11, 128  ;;  %s1565_s15 = smov [#allocation2]  }
  0x8a   : > { %p1404_p5 = scmp.ne.s32.totalorder %s1798_s11, %s1403_s13  ;;  %s1408_s17 = sshll.u32 %s1565_s15, 4  ;;  %s1409_s17 = int_to_ptr.vmem [resolvable:$false] %s1408_s17 }
  0x8b   : > { %s1410_s6 = scalar_lea.vmem %s1409_s17, 256  ;;  %p1411_p1 = scmp.lt.s32.totalorder %s1798_s11, %s1409_s17 }
  0x8c   : > { %p1406_p7 = pnand %p1404_p5, %p1390_p13  ;;  %p1412_p4 = scmp.lt.s32.totalorder %s1410_s6, %s1403_s13 }
  0x8e   : > { %p1407_p11 = pneg %p1406_p7  ;;  %p1413_p8 = por %p1412_p4, %p1411_p1 }
  0x90   : > { %p1414_p12 = pnand %p1413_p8, %p1407_p11 }
  0x92   : > { %1417 = shalt.err (!%p1414_p12)
}
  0x93   : > { %1171 = dma.hbm_to_vmem [thread:$0]  (!%p1804_p9), %s1811_s24, 128, %s1798_s11, %s267_s19  }
  0x94   : > { %s1010_s20 = sshll.u32 %s1554_s27, 1  ;;  %s290_s5 = scalar_lea.vmem [#allocation5], %s1788_s18 }
  0x95   : > { %s295_s16 = sadd.s32 %s1550_s26, %s1010_s20  ;;  %s299_s10 = sshll.u32 %s290_s5, 4  ;;  %s1843_s10 = int_to_ptr.vmem [resolvable:$true] %s299_s10 }
  0x96   : > { %s1011_s2 = sshll.u32 %s295_s16, 4  ;;  %s288_s17 = scalar_lea.sflag [#allocation6], %s287_s21 }
  0x97   : > { %s297_s15 = scalar_lea.hbm %s1962_s1, %s1011_s2  ;;  %s1423_s18 = scalar_lea.hbm %s1962_s1, 64 }
  0x98   : > { %s1418_s6 = scalar_lea.hbm %s297_s15, 16  ;;  %p1424_p10 = scmp.lt.u32.totalorder %s297_s15, %s1962_s1 }
  0x99   : > { %p1419_p2 = scmp.ne.s32.totalorder %s297_s15, %s1418_s6  ;;  %p1425_p5 = scmp.lt.u32.totalorder %s1423_s18, %s1418_s6 }
  0x9a   : > { %p1427_p11 = scmp.lt.u32.totalorder %s1418_s6, %s297_s15 }
  0x9b   : > { %p1421_p6 = pnand %p1419_p2, %p1390_p13  ;;  %p1426_p7 = por %p1425_p5, %p1424_p10 }
  0x9d   : > { %p1422_p0 = pneg %p1421_p6  ;;  %p1428_p1 = por %p1427_p11, %p1426_p7 }
  0x9f   : > { %p1429_p4 = pnand %p1428_p1, %p1422_p0 }
  0xa1   : > { %1432 = shalt.err (!%p1429_p4)
}
  0xa2   : > { %s1433_s21 = scalar_lea.vmem %s1843_s10, 16  ;;  %s1566_s16 = smov [#allocation5]  }
  0xa3   : > { %p1434_p8 = scmp.ne.s32.totalorder %s1843_s10, %s1433_s21  ;;  %s1438_s5 = sshll.u32 %s1566_s16, 4  ;;  %s1439_s5 = int_to_ptr.vmem [resolvable:$false] %s1438_s5 }
  0xa4   : > { %s1440_s2 = scalar_lea.vmem %s1439_s5, 32  ;;  %p1441_p6 = scmp.lt.s32.totalorder %s1843_s10, %s1439_s5 }
  0xa5   : > { %p1436_p12 = pnand %p1434_p8, %p1390_p13  ;;  %p1442_p10 = scmp.lt.s32.totalorder %s1440_s2, %s1433_s21 }
  0xa7   : > { %p1437_p2 = pneg %p1436_p12  ;;  %p1443_p5 = por %p1442_p10, %p1441_p6 }
  0xa9   : > { %p1444_p7 = pnand %p1443_p5, %p1437_p2 }
  0xab   : > { %1447 = shalt.err (!%p1444_p7)
}
  0xac   : > { %1174 = dma.hbm_to_vmem [thread:$0]  (!%p1804_p9), %s297_s15, 16, %s1843_s10, %s288_s17  }
  0xad   : > { %p1995_p0 = scmp.ne.s32.totalorder %s1984_s9, 0 }
  0xae   : > { %s1871_s30 = sand.u32 (!%p1995_p0), 1, %s1534_s22   ;;  %p1996_p13 = scmp.ne.s32.totalorder (!%p1995_p0), %s1981_s7, 0 }
  0xaf   : > { %308 = sbr.rel (%p1995_p0) target bundleno = 711 (0x2c7), region = 44  ;;  %s1013_s13 = sshll.u32 (!%p1995_p0), %s1871_s30, 3 }
  0xb0   : > { %s311_s6 = scalar_lea.sflag (!%p1995_p0), [#allocation3], %s1871_s30  ;;  %s1875_s11 = scalar_lea.vmem (!%p1995_p0), [#allocation2], %s1013_s13 }
  0xb6   : > { %1509 = dma.done.wait (%p1996_p13), %s311_s6, 128  }
  0xb7   : > { %1511 = vsyncadd (%p1996_p13), %s311_s6, 4294967168  ;;  %s319_s3 = sand.u32 1, %s1646_s29   ;;  %s322_s10 = scalar_lea.vmem [#allocation5], %s1871_s30 }
  0xb8   : > { %s320_s9 = scalar_lea.sflag [#allocation6], %s319_s3 }
  0xb9   : > { %1513 = dma.done.wait (%p1996_p13), %s320_s9, 16  }
  0xba   : > { %1515 = vsyncadd (%p1996_p13), %s320_s9, 4294967280  ;;  %p1997_p9 = scmp.eq.s32.totalorder %s1646_s29, 0 }
  0xbc   : > { %1517 = dma.done.wait (%p1997_p9), [#allocation6], 2048   ;;  %p1998_p11 = pmov %p1997_p9 }
  0xbd   : > { %p1999_p1 = pmov %p1997_p9 }
  0xbe   : > { %1519 = vsyncadd (%p1998_p11), [#allocation6], 4294965248 }
  0xbf   : > { %1521 = dma.done.wait (%p1999_p1), [#allocation9], 3072   ;;  %p2000_p4 = pmov %p1999_p1 }
  0xc0   : > { %v1258_v0 = vld [vmem:[#allocation8 + $0x40] sm:$0xff]   ;;  %v1260_v2 = vld [vmem:[#allocation8 + $0x48] sm:$0xff]   ;;  %v1262_v4 = vld [vmem:[#allocation8 + $0x50] sm:$0xff]   ;;  %v1567_v36 = vmov 0.0   ;;  %vm1568_vm0 = vmmov 0   ;;  %s2001_s15 = sld [smem:[#allocation18_spill]] }
  0xc1   : > { %1523 = vsyncadd (%p2000_p4), [#allocation9], 4294964224  ;;  %v1259_v1 = vld [vmem:[#allocation8] sm:$0xff]   ;;  %1089 = vmatprep.subr.bf16.mxu1 %v1258_v0  ;;  %v1261_v3 = vld [vmem:[#allocation8 + $0x8] sm:$0xff]   ;;  %s1017_s17 = sshll.u32 %s1871_s30, 2  ;;  %s1063_s24 = sshll.u32 %s1546_s25, 1 }
  0xc2   : > { %1090 = vmatpush3.bf16.msra.mxu1 %v1259_v1  ;;  %v1263_v5 = vld [vmem:[#allocation8 + $0x10] sm:$0xff]   ;;  %v1264_v6 = vld [vmem:[#allocation8 + $0x58] sm:$0xff]   ;;  %v1266_v8 = vld [vmem:[#allocation8 + $0x60] sm:$0xff]   ;;  %s366_s18 = scalar_lea.vmem [#allocation11], %s1017_s17  ;;  %vm841_vm1 = vcmask 1040384   ;;  %s2002_s2 = sld [smem:[#allocation24_spill]] }
  0xc3   : > { %1091 = vmatprep.subr.bf16.mxu1 %v1260_v2  ;;  %v1265_v7 = vld [vmem:[#allocation8 + $0x18] sm:$0xff]   ;;  %v1267_v9 = vld [vmem:[#allocation8 + $0x20] sm:$0xff]   ;;  %v1268_v10 = vld [vmem:[#allocation8 + $0x68] sm:$0xff]   ;;  %vm842_vm2 = vsmask.f32 256  ;;  %s863_s21 = sshll.u32 %s366_s18, 4  ;;  %s1909_s21 = int_to_ptr.vmem [resolvable:$true] %s863_s21 }
  0xc4   : > { %v368_v11 = vld [vmem:[%s1875_s11] sm:$0xff]  ;;  %v1276_v14 = vld [vmem:[#allocation7 + $0x40] sm:$0xff]   ;;  %vm843_vm3 = vmand %vm841_vm1, %vm842_vm2  ;;  %s848_s25 = scalar_lea.sflag [#allocation4], %s1871_s30  ;;  %s1448_s6 = scalar_lea.vmem %s1909_s21, 64 }
  0xc5   : > { %v1269_v12 = vld [vmem:[#allocation8 + $0x28] sm:$0xff]   ;;  %v1020_v13 = vcombine.high %v368_v11, %v368_v11  ;;  %v1277_v15 = vld [vmem:[#allocation7] sm:$0xff]   ;;  %v1270_v17 = vld [vmem:[#allocation8 + $0x70] sm:$0xff]   ;;  %1067 = vmatprep.subr.bf16.mxu0 %v1276_v14  ;;  %v1019_v26 = vcombine.low %v368_v11, %v368_v11  ;;  %p1449_p8 = scmp.ne.s32.totalorder %s1909_s21, %s1448_s6  ;;  %s1569_s11 = smov [#allocation11]  }
  0xc6   : > { %1092 = vmatpush3.bf16.msra.mxu1 %v1261_v3  ;;  %v1278_v16 = vld [vmem:[#allocation7 + $0x48] sm:$0xff]   ;;  %1068 = vmatpush3.bf16.msra.mxu0 %v1277_v15  ;;  %v1280_v19 = vld [vmem:[#allocation7 + $0x50] sm:$0xff]   ;;  %v1272_v21 = vld [vmem:[#allocation8 + $0x78] sm:$0xff]   ;;  %s859_s19 = sadd.s32 %s2001_s15, %s1063_s24  ;;  %s1452_s3 = sshll.u32 %s1569_s11, 4  ;;  %s1453_s3 = int_to_ptr.vmem [resolvable:$false] %s1452_s3 }
  0xc7   : > { %1093 = vmatprep.subr.bf16.mxu1 %v1262_v4  ;;  %711 = vmatprep.mubr.bf16.mxu1 %v1020_v13  ;;  %v1279_v18 = vld [vmem:[#allocation7 + $0x8] sm:$0xff]   ;;  %v1271_v20 = vld [vmem:[#allocation8 + $0x30] sm:$0xff]   ;;  %v1282_v23 = vld [vmem:[#allocation7 + $0x58] sm:$0xff]   ;;  %s1064_s20 = sshll.u32 %s859_s19, 6  ;;  %p1450_p12 = pnand %p1449_p8, %p1776_p3 }
  0xc8   : > { %543 = vmatprep.mubr.bf16.mxu0 %v1020_v13  ;;  %1069 = vmatprep.subr.bf16.mxu0 %v1278_v16  ;;  %v1281_v22 = vld [vmem:[#allocation7 + $0x10] sm:$0xff]   ;;  %v1273_v24 = vld [vmem:[#allocation8 + $0x38] sm:$0xff]   ;;  %v1284_v27 = vld [vmem:[#allocation7 + $0x60] sm:$0xff]   ;;  %s1907_s13 = scalar_lea.hbm %s2002_s2, %s1064_s20  ;;  %s1454_s9 = scalar_lea.vmem %s1453_s3, 128 }
  0xc9   : > { %v1283_v25 = vld [vmem:[#allocation7 + $0x18] sm:$0xff]   ;;  %v1285_v28 = vld [vmem:[#allocation7 + $0x20] sm:$0xff]   ;;  %v1286_v29 = vld [vmem:[#allocation7 + $0x68] sm:$0xff]   ;;  %p1451_p2 = pneg %p1450_p12  ;;  %p1455_p6 = scmp.lt.s32.totalorder %s1909_s21, %s1453_s3 }
  0xca   : > { %1094 = vmatpush3.bf16.msra.mxu1 %v1263_v5  ;;  %1070 = vmatpush3.bf16.msra.mxu0 %v1279_v18  ;;  %v1287_v30 = vld [vmem:[#allocation7 + $0x28] sm:$0xff]   ;;  %v1288_v31 = vld [vmem:[#allocation7 + $0x70] sm:$0xff]   ;;  %v1290_v33 = vld [vmem:[#allocation7 + $0x78] sm:$0xff]   ;;  %p1456_p10 = scmp.lt.s32.totalorder %s1454_s9, %s1448_s6 }
  0xcb   : > { %1095 = vmatprep.subr.bf16.mxu1 %v1264_v6  ;;  %1071 = vmatprep.subr.bf16.mxu0 %v1280_v19  ;;  %v1289_v32 = vld [vmem:[#allocation7 + $0x30] sm:$0xff]   ;;  %v1291_v34 = vld [vmem:[#allocation7 + $0x38] sm:$0xff]   ;;  %v1292_v35 = vld [vmem:[#allocation10] sm:$0xff]  }
  0xcc   : > { %v1293_v37 = vld [vmem:[#allocation10 + $0x8] sm:$0xff]   ;;  %v1294_v38 = vld [vmem:[#allocation10 + $0x10] sm:$0xff]   ;;  %v1295_v39 = vld [vmem:[#allocation10 + $0x18] sm:$0xff]   ;;  %p1457_p5 = por %p1456_p10, %p1455_p6 }
  0xcd   : > { %v1296_v40 = vld [vmem:[#allocation10 + $0x20] sm:$0xff]   ;;  %v1297_v41 = vld [vmem:[#allocation10 + $0x28] sm:$0xff]   ;;  %v1298_v42 = vld [vmem:[#allocation10 + $0x30] sm:$0xff]  }
  0xce   : > { %1096 = vmatpush3.bf16.msra.mxu1 %v1265_v7  ;;  %1072 = vmatpush3.bf16.msra.mxu0 %v1281_v22  ;;  %v1299_v43 = vld [vmem:[#allocation10 + $0x38] sm:$0xff]   ;;  %v1018_v59 = vld [vmem:[%s1965_s4] ss:$0 sm:$0xff]  ;;  %p1458_p7 = pnand %p1457_p5, %p1451_p2 }
  0xcf   : > { %1097 = vmatprep.subr.bf16.mxu1 %v1266_v8  ;;  %1073 = vmatprep.subr.bf16.mxu0 %v1282_v23  ;;  %v837_v63 = vld [vmem:[%s322_s10] sm:$0x1] }
  0xd2   : > { %1098 = vmatpush3.bf16.msra.mxu1 %v1267_v9  ;;  %1074 = vmatpush3.bf16.msra.mxu0 %v1283_v25 }
  0xd3   : > { %1099 = vmatprep.subr.bf16.mxu1 %v1268_v10  ;;  %1075 = vmatprep.subr.bf16.mxu0 %v1284_v27 }
  0xd6   : > { %1100 = vmatpush3.bf16.msra.mxu1 %v1269_v12  ;;  %1076 = vmatpush3.bf16.msra.mxu0 %v1285_v28 }
  0xd7   : > { %1101 = vmatprep.subr.bf16.mxu1 %v1270_v17  ;;  %1077 = vmatprep.subr.bf16.mxu0 %v1286_v29 }
  0xda   : > { %1102 = vmatpush3.bf16.msra.mxu1 %v1271_v20  ;;  %1078 = vmatpush3.bf16.msra.mxu0 %v1287_v30 }
  0xdb   : > { %1103 = vmatprep.subr.bf16.mxu1 %v1272_v21  ;;  %1079 = vmatprep.subr.bf16.mxu0 %v1288_v31 }
  0xde   : > { %1104 = vmatpush3.bf16.msra.mxu1 %v1273_v24  ;;  %1080 = vmatpush3.bf16.msra.mxu0 %v1289_v32 }
  0xdf   : > { %1081 = vmatprep.subr.bf16.mxu0 %v1290_v33 }
  0xe1   : > { %712 = vmatmul.mubr.bf16.vlgmr.msra.gmra.mrb[0].mxu1 %v1019_v26 }
  0xe2   : > { %1082 = vmatpush3.bf16.msra.mxu0 %v1291_v34 }
  0xe3   : > { %1120 = vmatprep.subr.bf16.mxu0 %v1567_v36 }
  0xe5   : > { %544 = vmatmul.mubr.bf16.vlgmr.msra.gmra.mrb[0].mxu0 %v1019_v26 }
  0xe6   : > { %1121 = vmatpush3.bf16.msra.mxu0 %v1292_v35  ;;  %1136 = vmatprep.mubr.msk.bf16.mxu0 %vm1568_vm0, %v1567_v36 }
  0xe7   : > { %1122 = vmatprep.subr.bf16.mxu0 %v1567_v36 }
  0xea   : > { %1123 = vmatpush3.bf16.msra.mxu0 %v1293_v37 }
  0xeb   : > { %1124 = vmatprep.subr.bf16.mxu0 %v1567_v36 }
  0xee   : > { %1125 = vmatpush3.bf16.msra.mxu0 %v1294_v38 }
  0xef   : > { %1126 = vmatprep.subr.bf16.mxu0 %v1567_v36 }
  0xf2   : > { %1127 = vmatpush3.bf16.msra.mxu0 %v1295_v39 }
  0xf3   : > { %1128 = vmatprep.subr.bf16.mxu0 %v1567_v36 }
  0xf6   : > { %1129 = vmatpush3.bf16.msra.mxu0 %v1296_v40 }
  0xf7   : > { %1130 = vmatprep.subr.bf16.mxu0 %v1567_v36 }
  0xfa   : > { %1131 = vmatpush3.bf16.msra.mxu0 %v1297_v41 }
  0xfb   : > { %1132 = vmatprep.subr.bf16.mxu0 %v1567_v36 }
  0xfe   : > { %1133 = vmatpush3.bf16.msra.mxu0 %v1298_v42 }
  0xff   : > { %1134 = vmatprep.subr.bf16.mxu0 %v1567_v36 }
 0x102   : > { %1135 = vmatpush3.bf16.msra.mxu0 %v1299_v43 }
 0x1b4   : > { %v1105_v44 = vpop.f32.mrb[0].mxu1 }
 0x1b5   : > { %v1106_v45 = vpop.f32.mrb[1].mxu1 }
 0x1b6   : > { %v1107_v46 = vadd.f32 %v1106_v45, %v1105_v44  ;;  %v1108_v47 = vpop.f32.mrb[2].mxu1 }
 0x1b7   : > { %v1109_v48 = vpop.f32.mrb[3].mxu1 }
 0x1b8   : > { %v1053_v49 = vmul.f32 -1.442695, %v1107_v46  ;;  %v1083_v52 = vpop.f32.mrb[0].mxu0 }
 0x1b9   : > { %v1084_v53 = vpop.f32.mrb[1].mxu0 }
 0x1ba   : > { %1300 = vpow2.f32 %v1053_v49  ;;  %v1085_v54 = vadd.f32 %v1084_v53, %v1083_v52  ;;  %v1086_v55 = vpop.f32.mrb[2].mxu0 }
 0x1bb   : > { %v1087_v56 = vpop.f32.mrb[3].mxu0 }
 0x1bc   : > { %v546_v60 = vadd.f32 %v1085_v54, %v1018_v59 }
 0x1be   : > { %v830_v61 = vrot.slane %v546_v60, 7 }
 0x1c4   : > { %v1301_v50 = vpop.eup %1300 }
 0x1c5   : > { %v722_v51 = vadd.f32 1.0, %v1301_v50 }
 0x1c7   : > { %1302 = vrcp.f32 %v722_v51 }
 0x1d1   : > { %v1303_v57 = vpop.eup %1302 }
 0x1d2   : > { %v725_v58 = vpack.c.bf16 %v1303_v57, %v1303_v57 }
 0x1d4   : > { %1137 = vmatmul.mubr.bf16.vlgmr.msra.gmra.mrb[4].mxu0 %v725_v58 }
 0x2a7   : > { %v824_v62 = vpop.f32.mrb[4].mxu0 }
 0x2a8   : > { %v831_v0 = vmul.f32 %v830_v61, %v824_v62  ;;  %v832_v1 = vsub.f32 1.0, %v824_v62  ;;  %v1138_v2 = vpop.f32.mrb[5].mxu0  ;;  %v838_v5 = vmul.f32 %v837_v63, %v824_v62 }
 0x2a9   : > { %v827_v3 = vpop.f32.mrb[6].mxu0 }
 0x2aa   : > { %v833_v4 = vmul.f32 %v832_v1, %v546_v60  ;;  %v1139_v6 = vpop.f32.mrb[7].mxu0 }
 0x2ac   : > { %v834_v7 = vadd.f32 %v833_v4, %v831_v0  ;;  %v839_v8 = vadd.f32 %v838_v5, %v833_v4 }
 0x2ae   : > { %v835_v9 = vpack.c.bf16 %v834_v7, %v834_v7  ;;  %v840_v10 = vpack.c.bf16 %v839_v8, %v839_v8 }
 0x2b0   : > { %836 = vst [vmem:[%s366_s18] sm:$0xf] %v835_v9 }
 0x2b7   : > { %v844_v11 = vld [vmem:[%s366_s18] sm:$0x1] }
 0x2b8   : > { %v845_v12 = vsel %vm843_vm3, %v840_v10, %v844_v11 }
 0x2b9   : > { %846 = vst [vmem:[%s366_s18] sm:$0x1] %v845_v12 }
 0x2ba   : > { %1461 = shalt.err (!%p1458_p7)
}
 0x2bb   : > { %s1462_s30 = scalar_lea.hbm %s1907_s13, 64  ;;  %s1466_s7 = scalar_lea.hbm %s2002_s2, 256 }
 0x2bc   : > { %p1463_p0 = scmp.ne.s32.totalorder %s1907_s13, %s1462_s30  ;;  %p1467_p11 = scmp.lt.u32.totalorder %s1907_s13, %s2002_s2 }
 0x2bd   : > { %p1468_p1 = scmp.lt.u32.totalorder %s1466_s7, %s1462_s30  ;;  %p1470_p8 = scmp.lt.u32.totalorder %s1462_s30, %s1907_s13 }
 0x2be   : > { %p1464_p13 = pnand %p1463_p0, %p1776_p3 }
 0x2bf   : > { %p1469_p4 = por %p1468_p1, %p1467_p11 }
 0x2c0   : > { %p1465_p9 = pneg %p1464_p13 }
 0x2c1   : > { %p1471_p12 = por %p1470_p8, %p1469_p4 }
 0x2c3   : > { %p1472_p2 = pnand %p1471_p12, %p1465_p9 }
 0x2c5   : > { %1475 = shalt.err (!%p1472_p2)
}
 0x2c6   : > { %1156 = dma.vmem_to_hbm [thread:$0]  (%p1776_p3), %s1909_s21, 64, %s1907_s13, %s848_s25  }
 0x2c7 PF: > { %s2003_s24 = sld [smem:[#allocation17_spill]]  ;;  %s2004_s18 = sld [smem:[#allocation19_spill]] }
 0x2c8   : > { %p1186_p6 = scmp.ge.s32.totalorder %s1558_s28, 2 }
 0x2cd   : > { %s875_s19 = sand.u32 1, %s2003_s24   ;;  %p2005_p10 = scmp.ne.s32.totalorder %s2004_s18, 0 }
 0x2ce   : > { %s876_s20 = scalar_lea.sflag [#allocation4], %s875_s19 }
 0x2cf   : > { %p1176_p5 = pnand %p1186_p6, %p2005_p10 }
 0x2d1   : > { %1525 = dma.done.wait (!%p1176_p5), %s876_s20, 64  }
 0x2d2   : > { %1527 = vsyncadd (!%p1176_p5), %s876_s20, 4294967232  ;;  %s26_s28 = sadd.s32 1, %s1558_s28   ;;  %s2006_s8 = sld [smem:[#allocation20_spill]] }
 0x2d3   : > { %p23_p7 = scmp.ge.s32.totalorder %s26_s28, 6   ;;  %s2007_s21 = smov %s1534_s22 }
 0x2d4   : > { %s2008_s22 = smov %s1538_s23  ;;  %s2009_s23 = smov %s1796_s14 }
 0x2d5   : > { %s2010_s24 = smov %s1550_s26  ;;  %s2011_s25 = smov %s1554_s27 }
 0x2d6   : > { %s2012_s26 = smov %s2015_s12  ;;  %25 = sbr.rel (!%p23_p7) target bundleno = 15 (0xf), region = 114 }
 0x2d8   : > { %s2013_s27 = smov %s2006_s8 }
 0x2dd   :  { %881 = vsyncpa [#allocation3], 1 }
 0x2de   :  { %883 = vsyncpa [#allocation3 + $0x1], 1 }
 0x2df   :  { %884 = vsyncpa [#allocation6], 1 }
 0x2e0   :  { %886 = vsyncpa [#allocation6 + $0x1], 1 }
 0x2e1   :  { %887 = vsyncpa [#allocation9], 1 }
 0x2e2   :  { %888 = vsyncpa [#allocation4], 1 }
 0x2e3   :  { %890 = vsyncpa [#allocation4 + $0x1], 1 }

// kernel: tpu_custom_call.1
= control target key start
LH: loop header
LB: loop body
LE: loop exit
PB: predicated region body
PF: predicated region fallthrough
CT: control target
= control target key end

     0   :  { %s1961_s0 = inlined_call_operand.hbm [shape: bf16[2,16,256], index: 0, kind: input, shape index: {}]   ;;  %s1962_s1 = inlined_call_operand.hbm [shape: f32[2,2,1,128], index: 1, kind: input, shape index: {}]   ;;  %s1963_s2 = inlined_call_operand.hbm [shape: bf16[256,128], index: 2, kind: input, shape index: {}]   ;;  %s1964_s3 = inlined_call_operand.hbm [shape: bf16[256,128], index: 3, kind: input, shape index: {}]   ;;  %s1965_s4 = inlined_call_operand.vmem [shape: f32[1,128], index: 4, kind: input, shape index: {}]   ;;  %s1966_s5 = inlined_call_operand.hbm [shape: bf16[128,128], index: 5, kind: input, shape index: {}]   ;;  %s1967_s6 = inlined_call_operand.hbm [shape: bf16[2,16,128], index: 6, kind: output, shape index: {}]  }
   0x1   :  { %1975 = sst [smem:[#allocation21_spill]] %s1963_s2 }
   0x2   :  { %1976 = sst [smem:[#allocation22_spill]] %s1964_s3 }
   0x3   :  { %1977 = sst [smem:[#allocation23_spill]] %s1966_s5 }
   0x4   :  { %1978 = sst [smem:[#allocation24_spill]] %s1967_s6 }
   0x5   :  { %11 = vsyncpa [#allocation3], 0 }
   0x6   :  { %13 = vsyncpa [#allocation3 + $0x1], 0 }
   0x7   :  { %14 = vsyncpa [#allocation6], 0 }
   0x8   :  { %16 = vsyncpa [#allocation6 + $0x1], 0 }
   0x9   :  { %17 = vsyncpa [#allocation9], 0 }
   0xa   :  { %18 = vsyncpa [#allocation4], 0 }
   0xb   :  { %20 = vsyncpa [#allocation4 + $0x1], 0  ;;  %s1605_s21 = smov 0   ;;  %s1607_s22 = smov 0  }
   0xc   :  { %s1609_s23 = smov 0   ;;  %s1611_s24 = smov 0  }
   0xd   :  { %s1613_s25 = smov 0   ;;  %s1615_s26 = smov 0  }
   0xe   :  { %s1617_s27 = smov 0   ;;  %s1619_s28 = smov 0  }
   0xf LB: > { %1979 = sst [smem:[#allocation17_spill]] %s1530_s21  ;;  %s1646_s29 = sadd.s32 4294967295, %s1558_s28   ;;  %s1558_s28 = sphi %s1619_s28, %s26_s28   ;;  %s1554_s27 = sphi %s1617_s27, %s2013_s27   ;;  %s1550_s26 = sphi %s1615_s26, %s2012_s26   ;;  %s1546_s25 = sphi %s1613_s25, %s2011_s25   ;;  %s1542_s24 = sphi %s1611_s24, %s2010_s24   ;;  %s1538_s23 = sphi %s1609_s23, %s2009_s23   ;;  %s1534_s22 = sphi %s1607_s22, %s2008_s22   ;;  %s1530_s21 = sphi %s1605_s21, %s2007_s21  }
  0x10   : > { %1980 = sst [smem:[#allocation18_spill]] %s1542_s24  ;;  %s1000_s30 = sadd.s32 4294967294, %s1558_s28  }
  0x11   : > { %p60_p0 = scmp.ne.s32.totalorder %s1534_s22, %s1530_s21  ;;  %p1968_p1 = scmp.eq.s32.totalorder %s1646_s29, 0 }
  0x12   : > { %p204_p3 = scmp.eq.s32.totalorder %s1000_s30, 3  ;;  %p1001_p5 = scmp.ge.s32.totalorder %s1558_s28, 1 }
  0x13   : > { %p1655_p4 = por %p1968_p1, %p60_p0  ;;  %p211_p7 = scmp.lt.s32.totalorder %s1558_s28, 5 }
  0x14   : > { %p1660_p6 = por %p204_p3, %p60_p0  ;;  %s1560_s10 = smov [#allocation7]  }
  0x15   : > { %s1981_s7 = scalar_select %p1655_p4, 1, 0 }
  0x16   : > { %s1982_s8 = scalar_select %p1660_p6, 1, 0 }
  0x17   : > { %p1665_p8 = pnand %p1001_p5, %p211_p7  ;;  %s223_s11 = sshll.u32 %s1560_s10, 4  ;;  %s1669_s11 = int_to_ptr.vmem [resolvable:$true] %s223_s11 }
  0x18   : > { %1983 = sst [smem:[#allocation19_spill]] %s1982_s8  ;;  %s1561_s13 = smov [#allocation8]  }
  0x19   : > { %s1984_s9 = scalar_select %p1665_p8, 1, 0 }
  0x1a   : > { %p1158_p9 = pneg %p1665_p8  ;;  %s236_s14 = sshll.u32 %s1561_s13, 4  ;;  %s1679_s14 = int_to_ptr.vmem [resolvable:$true] %s236_s14 }
  0x1b   : > { %s1562_s15 = smov [#allocation10]   ;;  %s1986_s2 = sld [smem:[#allocation21_spill]] }
  0x1c   : > { %p1675_p10 = pnand %p1158_p9, %p1968_p1  ;;  %s1681_s16 = sshll.u32 %s1562_s15, 4  ;;  %s253_s16 = int_to_ptr.vmem [resolvable:$true] %s1681_s16 }
  0x1e   : > { %p1691_p12 = pneg %p1675_p10 }
  0x21   : > { %s1304_s19 = scalar_lea.hbm %s1986_s2, 2048 }
  0x22   : > { %p1305_p11 = scmp.ne.s32.totalorder %s1986_s2, %s1304_s19  ;;  %p1311_p3 = scmp.lt.u32.totalorder %s1304_s19, %s1986_s2 }
  0x24   : > { %p1307_p13 = pnand %p1691_p12, %p1305_p11 }
  0x26   : > { %p1308_p0 = pneg %p1307_p13 }
  0x28   : > { %p1313_p5 = pnand %p1311_p3, %p1308_p0 }
  0x2a   : > { %1316 = shalt.err (!%p1313_p5)
}
  0x2b   : > { %s1317_s17 = scalar_lea.vmem %s1669_s11, 2048  ;;  %p1325_p2 = scmp.lt.s32.totalorder %s1669_s11, %s1669_s11 }
  0x2c   : > { %p1318_p7 = scmp.ne.s32.totalorder %s1669_s11, %s1317_s17  ;;  %p1326_p6 = scmp.lt.s32.totalorder %s1317_s17, %s1317_s17 }
  0x2e   : > { %p1320_p9 = pnand %p1318_p7, %p1691_p12  ;;  %p1327_p11 = por %p1326_p6, %p1325_p2 }
  0x30   : > { %p1321_p1 = pneg %p1320_p9 }
  0x32   : > { %p1328_p13 = pnand %p1327_p11, %p1321_p1 }
  0x34   : > { %1331 = shalt.err (!%p1328_p13)
}
  0x35   : > { %s1563_s18 = smov 64   ;;  %s1564_s19 = smov 4  }
  0x36   : > { %1161 = dma.hbm_to_vmem [thread:$0]  (!%p1675_p10), %s1986_s2, 2048, %s1669_s11, [#allocation6], %s1563_s18, %s1563_s18, %s1564_s19  }
  0x37   : > { %s1988_s3 = sld [smem:[#allocation22_spill]] }
  0x3d   : > { %s1332_s17 = scalar_lea.hbm %s1988_s3, 2048 }
  0x3e   : > { %p1333_p1 = scmp.ne.s32.totalorder %s1988_s3, %s1332_s17  ;;  %p1339_p0 = scmp.lt.u32.totalorder %s1332_s17, %s1988_s3 }
  0x40   : > { %p1335_p2 = pnand %p1333_p1, %p1691_p12 }
  0x42   : > { %p1336_p6 = pneg %p1335_p2 }
  0x44   : > { %p1341_p3 = pnand %p1339_p0, %p1336_p6 }
  0x46   : > { %1344 = shalt.err (!%p1341_p3)
}
  0x47   : > { %s1345_s11 = scalar_lea.vmem %s1679_s14, 2048  ;;  %p1353_p11 = scmp.lt.s32.totalorder %s1679_s14, %s1679_s14 }
  0x48   : > { %p1346_p5 = scmp.ne.s32.totalorder %s1679_s14, %s1345_s11  ;;  %p1354_p13 = scmp.lt.s32.totalorder %s1345_s11, %s1345_s11 }
  0x4a   : > { %p1348_p7 = pnand %p1346_p5, %p1691_p12  ;;  %p1355_p1 = por %p1354_p13, %p1353_p11 }
  0x4c   : > { %p1349_p9 = pneg %p1348_p7 }
  0x4e   : > { %p1356_p2 = pnand %p1355_p1, %p1349_p9 }
  0x50   : > { %1359 = shalt.err (!%p1356_p2)
}
  0x51   : > { %1164 = dma.hbm_to_vmem [thread:$0]  (!%p1675_p10), %s1988_s3, 2048, %s1679_s14, [#allocation9], %s1563_s18, %s1563_s18, %s1564_s19  }
  0x52   : > { %s1989_s5 = sld [smem:[#allocation23_spill]] }
  0x58   : > { %s1360_s20 = scalar_lea.hbm %s1989_s5, 1024 }
  0x59   : > { %p1361_p6 = scmp.ne.s32.totalorder %s1989_s5, %s1360_s20  ;;  %p1367_p5 = scmp.lt.u32.totalorder %s1360_s20, %s1989_s5 }
  0x5b   : > { %p1363_p0 = pnand %p1361_p6, %p1691_p12 }
  0x5d   : > { %p1364_p3 = pneg %p1363_p0 }
  0x5f   : > { %p1369_p7 = pnand %p1367_p5, %p1364_p3 }
  0x61   : > { %1372 = shalt.err (!%p1369_p7)
}
  0x62   : > { %s1373_s11 = scalar_lea.vmem %s253_s16, 1024  ;;  %p1381_p1 = scmp.lt.s32.totalorder %s253_s16, %s253_s16 }
  0x63   : > { %p1374_p9 = scmp.ne.s32.totalorder %s253_s16, %s1373_s11  ;;  %p1382_p2 = scmp.lt.s32.totalorder %s1373_s11, %s1373_s11 }
  0x65   : > { %p1376_p11 = pnand %p1374_p9, %p1691_p12  ;;  %p1383_p4 = por %p1382_p2, %p1381_p1 }
  0x67   : > { %p1377_p13 = pneg %p1376_p11 }
  0x69   : > { %p1384_p8 = pnand %p1383_p4, %p1377_p13 }
  0x6b   : > { %1387 = shalt.err (!%p1384_p8)
}
  0x6c   : > { %1167 = dma.hbm_to_vmem [thread:$0]  (!%p1675_p10), %s1989_s5, 1024, %s253_s16, [#allocation9], %s1563_s18, %s1563_s18, %s1564_s19  }
  0x6d   : > { %s35_s12 = sadd.s32 1, %s1550_s26  ;;  %s38_s10 = sadd.s32 1, %s1554_s27 }
  0x6e   : > { %p36_p4 = scmp.ge.s32.totalorder %s35_s12, 2  ;;  %s47_s21 = sadd.s32 1, %s1538_s23 }
  0x6f   : > { %p54_p8 = scmp.ne.s32.totalorder %s1538_s23, %s1534_s22  ;;  %p55_p12 = scmp.eq.s32.totalorder %s1558_s28, 0 }
  0x70   : > { %s2015_s12 = smov (%p36_p4, %s35_s12), 0  ;;  %s2017_s10 = smov (!%p36_p4, %s38_s10), %s1554_s27 }
  0x71   : > { %s43_s24 = ssub.s32 %s1550_s26, %s2015_s12  ;;  %p40_p6 = scmp.ge.s32.totalorder %s2017_s10, 2 }
  0x72   : > { %p1990_p0 = scmp.eq.s32.totalorder %s1646_s29, 3  ;;  %p1780_p10 = por %p55_p12, %p54_p8 }
  0x73   : > { %p1182_p5 = scmp.lt.s32.totalorder %s1558_s28, 4  ;;  %s2019_s10 = smov (%p40_p6, %s2017_s10), 0 }
  0x74   : > { %p1776_p3 = por %p1990_p0, %p54_p8  ;;  %1993 = sst [smem:[#allocation20_spill]] %s2019_s10 }
  0x75   : > { %s1788_s18 = sand.u32 1, %s1538_s23   ;;  %s1007_s19 = sshll.u32 %s1550_s26, 1 }
  0x76   : > { %s42_s20 = ssub.s32 %s1554_s27, %s2019_s10  ;;  %s1006_s13 = sshll.u32 %s1788_s18, 3 }
  0x77   : > { %s44_s30 = sor.u32 %s43_s24, %s42_s20  ;;  %s1008_s15 = sshll.u32 %s1554_s27, 2 }
  0x78   : > { %p45_p7 = scmp.eq.s32.totalorder %s44_s30, 0  ;;  %s270_s17 = scalar_lea.vmem [#allocation2], %s1006_s13 }
  0x79   : > { %s280_s11 = sshll.u32 %s270_s17, 4  ;;  %s276_s6 = sadd.s32 %s1008_s15, %s1007_s19  ;;  %s1798_s11 = int_to_ptr.vmem [resolvable:$true] %s280_s11 }
  0x7a   : > { %s1796_s14 = scalar_select %p45_p7, %s1538_s23, %s47_s21  }
  0x7b   : > { %s1009_s2 = sshll.u32 %s276_s6, 6  ;;  %p1804_p9 = pnand %p1182_p5, %p1780_p10 }
  0x7c   : > { %s1811_s24 = scalar_lea.hbm %s1961_s0, %s1009_s2  ;;  %s287_s21 = sand.u32 1, %s1558_s28  }
  0x7d   : > { %s267_s19 = scalar_lea.sflag [#allocation3], %s1788_s18  ;;  %s1388_s20 = scalar_lea.hbm %s1811_s24, 128 }
  0x7e   : > { %p1389_p11 = scmp.ne.s32.totalorder %s1811_s24, %s1388_s20  ;;  %p1390_p13 = pneg %p1804_p9 }
  0x7f   : > { %s1393_s10 = scalar_lea.hbm %s1961_s0, 512  ;;  %p1394_p4 = scmp.lt.u32.totalorder %s1811_s24, %s1961_s0 }
  0x80   : > { %p1391_p1 = pnand %p1390_p13, %p1389_p11  ;;  %p1395_p8 = scmp.lt.u32.totalorder %s1393_s10, %s1388_s20 }
  0x81   : > { %p1397_p6 = scmp.lt.u32.totalorder %s1388_s20, %s1811_s24 }
  0x82   : > { %p1392_p2 = pneg %p1391_p1  ;;  %p1396_p12 = por %p1395_p8, %p1394_p4 }
  0x84   : > { %p1398_p0 = por %p1397_p6, %p1396_p12 }
  0x86   : > { %p1399_p10 = pnand %p1398_p0, %p1392_p2 }
  0x88   : > { %1402 = shalt.err (!%p1399_p10)
}
  0x89   : > { %s1403_s13 = scalar_lea.vmem %s1798_s11, 128  ;;  %s1565_s15 = smov [#allocation2]  }
  0x8a   : > { %p1404_p5 = scmp.ne.s32.totalorder %s1798_s11, %s1403_s13  ;;  %s1408_s17 = sshll.u32 %s1565_s15, 4  ;;  %s1409_s17 = int_to_ptr.vmem [resolvable:$false] %s1408_s17 }
  0x8b   : > { %s1410_s6 = scalar_lea.vmem %s1409_s17, 256  ;;  %p1411_p1 = scmp.lt.s32.totalorder %s1798_s11, %s1409_s17 }
  0x8c   : > { %p1406_p7 = pnand %p1404_p5, %p1390_p13  ;;  %p1412_p4 = scmp.lt.s32.totalorder %s1410_s6, %s1403_s13 }
  0x8e   : > { %p1407_p11 = pneg %p1406_p7  ;;  %p1413_p8 = por %p1412_p4, %p1411_p1 }
  0x90   : > { %p1414_p12 = pnand %p1413_p8, %p1407_p11 }
  0x92   : > { %1417 = shalt.err (!%p1414_p12)
}
  0x93   : > { %1171 = dma.hbm_to_vmem [thread:$0]  (!%p1804_p9), %s1811_s24, 128, %s1798_s11, %s267_s19  }
  0x94   : > { %s1010_s20 = sshll.u32 %s1554_s27, 1  ;;  %s290_s5 = scalar_lea.vmem [#allocation5], %s1788_s18 }
  0x95   : > { %s295_s16 = sadd.s32 %s1550_s26, %s1010_s20  ;;  %s299_s10 = sshll.u32 %s290_s5, 4  ;;  %s1843_s10 = int_to_ptr.vmem [resolvable:$true] %s299_s10 }
  0x96   : > { %s1011_s2 = sshll.u32 %s295_s16, 4  ;;  %s288_s17 = scalar_lea.sflag [#allocation6], %s287_s21 }
  0x97   : > { %s297_s15 = scalar_lea.hbm %s1962_s1, %s1011_s2  ;;  %s1423_s18 = scalar_lea.hbm %s1962_s1, 64 }
  0x98   : > { %s1418_s6 = scalar_lea.hbm %s297_s15, 16  ;;  %p1424_p10 = scmp.lt.u32.totalorder %s297_s15, %s1962_s1 }
  0x99   : > { %p1419_p2 = scmp.ne.s32.totalorder %s297_s15, %s1418_s6  ;;  %p1425_p5 = scmp.lt.u32.totalorder %s1423_s18, %s1418_s6 }
  0x9a   : > { %p1427_p11 = scmp.lt.u32.totalorder %s1418_s6, %s297_s15 }
  0x9b   : > { %p1421_p6 = pnand %p1419_p2, %p1390_p13  ;;  %p1426_p7 = por %p1425_p5, %p1424_p10 }
  0x9d   : > { %p1422_p0 = pneg %p1421_p6  ;;  %p1428_p1 = por %p1427_p11, %p1426_p7 }
  0x9f   : > { %p1429_p4 = pnand %p1428_p1, %p1422_p0 }
  0xa1   : > { %1432 = shalt.err (!%p1429_p4)
}
  0xa2   : > { %s1433_s21 = scalar_lea.vmem %s1843_s10, 16  ;;  %s1566_s16 = smov [#allocation5]  }
  0xa3   : > { %p1434_p8 = scmp.ne.s32.totalorder %s1843_s10, %s1433_s21  ;;  %s1438_s5 = sshll.u32 %s1566_s16, 4  ;;  %s1439_s5 = int_to_ptr.vmem [resolvable:$false] %s1438_s5 }
  0xa4   : > { %s1440_s2 = scalar_lea.vmem %s1439_s5, 32  ;;  %p1441_p6 = scmp.lt.s32.totalorder %s1843_s10, %s1439_s5 }
  0xa5   : > { %p1436_p12 = pnand %p1434_p8, %p1390_p13  ;;  %p1442_p10 = scmp.lt.s32.totalorder %s1440_s2, %s1433_s21 }
  0xa7   : > { %p1437_p2 = pneg %p1436_p12  ;;  %p1443_p5 = por %p1442_p10, %p1441_p6 }
  0xa9   : > { %p1444_p7 = pnand %p1443_p5, %p1437_p2 }
  0xab   : > { %1447 = shalt.err (!%p1444_p7)
}
  0xac   : > { %1174 = dma.hbm_to_vmem [thread:$0]  (!%p1804_p9), %s297_s15, 16, %s1843_s10, %s288_s17  }
  0xad   : > { %p1995_p0 = scmp.ne.s32.totalorder %s1984_s9, 0 }
  0xae   : > { %s1871_s30 = sand.u32 (!%p1995_p0), 1, %s1534_s22   ;;  %p1996_p13 = scmp.ne.s32.totalorder (!%p1995_p0), %s1981_s7, 0 }
  0xaf   : > { %308 = sbr.rel (%p1995_p0) target bundleno = 711 (0x2c7), region = 44  ;;  %s1013_s13 = sshll.u32 (!%p1995_p0), %s1871_s30, 3 }
  0xb0   : > { %s311_s6 = scalar_lea.sflag (!%p1995_p0), [#allocation3], %s1871_s30  ;;  %s1875_s11 = scalar_lea.vmem (!%p1995_p0), [#allocation2], %s1013_s13 }
  0xb6   : > { %1509 = dma.done.wait (%p1996_p13), %s311_s6, 128  }
  0xb7   : > { %1511 = vsyncadd (%p1996_p13), %s311_s6, 4294967168  ;;  %s319_s3 = sand.u32 1, %s1646_s29   ;;  %s322_s10 = scalar_lea.vmem [#allocation5], %s1871_s30 }
  0xb8   : > { %s320_s9 = scalar_lea.sflag [#allocation6], %s319_s3 }
  0xb9   : > { %1513 = dma.done.wait (%p1996_p13), %s320_s9, 16  }
  0xba   : > { %1515 = vsyncadd (%p1996_p13), %s320_s9, 4294967280  ;;  %p1997_p9 = scmp.eq.s32.totalorder %s1646_s29, 0 }
  0xbc   : > { %1517 = dma.done.wait (%p1997_p9), [#allocation6], 2048   ;;  %p1998_p11 = pmov %p1997_p9 }
  0xbd   : > { %p1999_p1 = pmov %p1997_p9 }
  0xbe   : > { %1519 = vsyncadd (%p1998_p11), [#allocation6], 4294965248 }
  0xbf   : > { %1521 = dma.done.wait (%p1999_p1), [#allocation9], 3072   ;;  %p2000_p4 = pmov %p1999_p1 }
  0xc0   : > { %v1258_v0 = vld [vmem:[#allocation8 + $0x40] sm:$0xff]   ;;  %v1260_v2 = vld [vmem:[#allocation8 + $0x48] sm:$0xff]   ;;  %v1262_v4 = vld [vmem:[#allocation8 + $0x50] sm:$0xff]   ;;  %v1567_v36 = vmov 0.0   ;;  %vm1568_vm0 = vmmov 0   ;;  %s2001_s15 = sld [smem:[#allocation18_spill]] }
  0xc1   : > { %1523 = vsyncadd (%p2000_p4), [#allocation9], 4294964224  ;;  %v1259_v1 = vld [vmem:[#allocation8] sm:$0xff]   ;;  %1089 = vmatprep.subr.bf16.mxu1 %v1258_v0  ;;  %v1261_v3 = vld [vmem:[#allocation8 + $0x8] sm:$0xff]   ;;  %s1017_s17 = sshll.u32 %s1871_s30, 2  ;;  %s1063_s24 = sshll.u32 %s1546_s25, 1 }
  0xc2   : > { %1090 = vmatpush3.bf16.msra.mxu1 %v1259_v1  ;;  %v1263_v5 = vld [vmem:[#allocation8 + $0x10] sm:$0xff]   ;;  %v1264_v6 = vld [vmem:[#allocation8 + $0x58] sm:$0xff]   ;;  %v1266_v8 = vld [vmem:[#allocation8 + $0x60] sm:$0xff]   ;;  %s366_s18 = scalar_lea.vmem [#allocation11], %s1017_s17  ;;  %vm841_vm1 = vcmask 1040384   ;;  %s2002_s2 = sld [smem:[#allocation24_spill]] }
  0xc3   : > { %1091 = vmatprep.subr.bf16.mxu1 %v1260_v2  ;;  %v1265_v7 = vld [vmem:[#allocation8 + $0x18] sm:$0xff]   ;;  %v1267_v9 = vld [vmem:[#allocation8 + $0x20] sm:$0xff]   ;;  %v1268_v10 = vld [vmem:[#allocation8 + $0x68] sm:$0xff]   ;;  %vm842_vm2 = vsmask.f32 256  ;;  %s863_s21 = sshll.u32 %s366_s18, 4  ;;  %s1909_s21 = int_to_ptr.vmem [resolvable:$true] %s863_s21 }
  0xc4   : > { %v368_v11 = vld [vmem:[%s1875_s11] sm:$0xff]  ;;  %v1276_v14 = vld [vmem:[#allocation7 + $0x40] sm:$0xff]   ;;  %vm843_vm3 = vmand %vm841_vm1, %vm842_vm2  ;;  %s848_s25 = scalar_lea.sflag [#allocation4], %s1871_s30  ;;  %s1448_s6 = scalar_lea.vmem %s1909_s21, 64 }
  0xc5   : > { %v1269_v12 = vld [vmem:[#allocation8 + $0x28] sm:$0xff]   ;;  %v1020_v13 = vcombine.high %v368_v11, %v368_v11  ;;  %v1277_v15 = vld [vmem:[#allocation7] sm:$0xff]   ;;  %v1270_v17 = vld [vmem:[#allocation8 + $0x70] sm:$0xff]   ;;  %1067 = vmatprep.subr.bf16.mxu0 %v1276_v14  ;;  %v1019_v26 = vcombine.low %v368_v11, %v368_v11  ;;  %p1449_p8 = scmp.ne.s32.totalorder %s1909_s21, %s1448_s6  ;;  %s1569_s11 = smov [#allocation11]  }
  0xc6   : > { %1092 = vmatpush3.bf16.msra.mxu1 %v1261_v3  ;;  %v1278_v16 = vld [vmem:[#allocation7 + $0x48] sm:$0xff]   ;;  %1068 = vmatpush3.bf16.msra.mxu0 %v1277_v15  ;;  %v1280_v19 = vld [vmem:[#allocation7 + $0x50] sm:$0xff]   ;;  %v1272_v21 = vld [vmem:[#allocation8 + $0x78] sm:$0xff]   ;;  %s859_s19 = sadd.s32 %s2001_s15, %s1063_s24  ;;  %s1452_s3 = sshll.u32 %s1569_s11, 4  ;;  %s1453_s3 = int_to_ptr.vmem [resolvable:$false] %s1452_s3 }
  0xc7   : > { %1093 = vmatprep.subr.bf16.mxu1 %v1262_v4  ;;  %711 = vmatprep.mubr.bf16.mxu1 %v1020_v13  ;;  %v1279_v18 = vld [vmem:[#allocation7 + $0x8] sm:$0xff]   ;;  %v1271_v20 = vld [vmem:[#allocation8 + $0x30] sm:$0xff]   ;;  %v1282_v23 = vld [vmem:[#allocation7 + $0x58] sm:$0xff]   ;;  %s1064_s20 = sshll.u32 %s859_s19, 6  ;;  %p1450_p12 = pnand %p1449_p8, %p1776_p3 }
  0xc8   : > { %543 = vmatprep.mubr.bf16.mxu0 %v1020_v13  ;;  %1069 = vmatprep.subr.bf16.mxu0 %v1278_v16  ;;  %v1281_v22 = vld [vmem:[#allocation7 + $0x10] sm:$0xff]   ;;  %v1273_v24 = vld [vmem:[#allocation8 + $0x38] sm:$0xff]   ;;  %v1284_v27 = vld [vmem:[#allocation7 + $0x60] sm:$0xff]   ;;  %s1907_s13 = scalar_lea.hbm %s2002_s2, %s1064_s20  ;;  %s1454_s9 = scalar_lea.vmem %s1453_s3, 128 }
  0xc9   : > { %v1283_v25 = vld [vmem:[#allocation7 + $0x18] sm:$0xff]   ;;  %v1285_v28 = vld [vmem:[#allocation7 + $0x20] sm:$0xff]   ;;  %v1286_v29 = vld [vmem:[#allocation7 + $0x68] sm:$0xff]   ;;  %p1451_p2 = pneg %p1450_p12  ;;  %p1455_p6 = scmp.lt.s32.totalorder %s1909_s21, %s1453_s3 }
  0xca   : > { %1094 = vmatpush3.bf16.msra.mxu1 %v1263_v5  ;;  %1070 = vmatpush3.bf16.msra.mxu0 %v1279_v18  ;;  %v1287_v30 = vld [vmem:[#allocation7 + $0x28] sm:$0xff]   ;;  %v1288_v31 = vld [vmem:[#allocation7 + $0x70] sm:$0xff]   ;;  %v1290_v33 = vld [vmem:[#allocation7 + $0x78] sm:$0xff]   ;;  %p1456_p10 = scmp.lt.s32.totalorder %s1454_s9, %s1448_s6 }
  0xcb   : > { %1095 = vmatprep.subr.bf16.mxu1 %v1264_v6  ;;  %1071 = vmatprep.subr.bf16.mxu0 %v1280_v19  ;;  %v1289_v32 = vld [vmem:[#allocation7 + $0x30] sm:$0xff]   ;;  %v1291_v34 = vld [vmem:[#allocation7 + $0x38] sm:$0xff]   ;;  %v1292_v35 = vld [vmem:[#allocation10] sm:$0xff]  }
  0xcc   : > { %v1293_v37 = vld [vmem:[#allocation10 + $0x8] sm:$0xff]   ;;  %v1294_v38 = vld [vmem:[#allocation10 + $0x10] sm:$0xff]   ;;  %v1295_v39 = vld [vmem:[#allocation10 + $0x18] sm:$0xff]   ;;  %p1457_p5 = por %p1456_p10, %p1455_p6 }
  0xcd   : > { %v1296_v40 = vld [vmem:[#allocation10 + $0x20] sm:$0xff]   ;;  %v1297_v41 = vld [vmem:[#allocation10 + $0x28] sm:$0xff]   ;;  %v1298_v42 = vld [vmem:[#allocation10 + $0x30] sm:$0xff]  }
  0xce   : > { %1096 = vmatpush3.bf16.msra.mxu1 %v1265_v7  ;;  %1072 = vmatpush3.bf16.msra.mxu0 %v1281_v22  ;;  %v1299_v43 = vld [vmem:[#allocation10 + $0x38] sm:$0xff]   ;;  %v1018_v59 = vld [vmem:[%s1965_s4] ss:$0 sm:$0xff]  ;;  %p1458_p7 = pnand %p1457_p5, %p1451_p2 }
  0xcf   : > { %1097 = vmatprep.subr.bf16.mxu1 %v1266_v8  ;;  %1073 = vmatprep.subr.bf16.mxu0 %v1282_v23  ;;  %v837_v63 = vld [vmem:[%s322_s10] sm:$0x1] }
  0xd2   : > { %1098 = vmatpush3.bf16.msra.mxu1 %v1267_v9  ;;  %1074 = vmatpush3.bf16.msra.mxu0 %v1283_v25 }
  0xd3   : > { %1099 = vmatprep.subr.bf16.mxu1 %v1268_v10  ;;  %1075 = vmatprep.subr.bf16.mxu0 %v1284_v27 }
  0xd6   : > { %1100 = vmatpush3.bf16.msra.mxu1 %v1269_v12  ;;  %1076 = vmatpush3.bf16.msra.mxu0 %v1285_v28 }
  0xd7   : > { %1101 = vmatprep.subr.bf16.mxu1 %v1270_v17  ;;  %1077 = vmatprep.subr.bf16.mxu0 %v1286_v29 }
  0xda   : > { %1102 = vmatpush3.bf16.msra.mxu1 %v1271_v20  ;;  %1078 = vmatpush3.bf16.msra.mxu0 %v1287_v30 }
  0xdb   : > { %1103 = vmatprep.subr.bf16.mxu1 %v1272_v21  ;;  %1079 = vmatprep.subr.bf16.mxu0 %v1288_v31 }
  0xde   : > { %1104 = vmatpush3.bf16.msra.mxu1 %v1273_v24  ;;  %1080 = vmatpush3.bf16.msra.mxu0 %v1289_v32 }
  0xdf   : > { %1081 = vmatprep.subr.bf16.mxu0 %v1290_v33 }
  0xe1   : > { %712 = vmatmul.mubr.bf16.vlgmr.msra.gmra.mrb[0].mxu1 %v1019_v26 }
  0xe2   : > { %1082 = vmatpush3.bf16.msra.mxu0 %v1291_v34 }
  0xe3   : > { %1120 = vmatprep.subr.bf16.mxu0 %v1567_v36 }
  0xe5   : > { %544 = vmatmul.mubr.bf16.vlgmr.msra.gmra.mrb[0].mxu0 %v1019_v26 }
  0xe6   : > { %1121 = vmatpush3.bf16.msra.mxu0 %v1292_v35  ;;  %1136 = vmatprep.mubr.msk.bf16.mxu0 %vm1568_vm0, %v1567_v36 }
  0xe7   : > { %1122 = vmatprep.subr.bf16.mxu0 %v1567_v36 }
  0xea   : > { %1123 = vmatpush3.bf16.msra.mxu0 %v1293_v37 }
  0xeb   : > { %1124 = vmatprep.subr.bf16.mxu0 %v1567_v36 }
  0xee   : > { %1125 = vmatpush3.bf16.msra.mxu0 %v1294_v38 }
  0xef   : > { %1126 = vmatprep.subr.bf16.mxu0 %v1567_v36 }
  0xf2   : > { %1127 = vmatpush3.bf16.msra.mxu0 %v1295_v39 }
  0xf3   : > { %1128 = vmatprep.subr.bf16.mxu0 %v1567_v36 }
  0xf6   : > { %1129 = vmatpush3.bf16.msra.mxu0 %v1296_v40 }
  0xf7   : > { %1130 = vmatprep.subr.bf16.mxu0 %v1567_v36 }
  0xfa   : > { %1131 = vmatpush3.bf16.msra.mxu0 %v1297_v41 }
  0xfb   : > { %1132 = vmatprep.subr.bf16.mxu0 %v1567_v36 }
  0xfe   : > { %1133 = vmatpush3.bf16.msra.mxu0 %v1298_v42 }
  0xff   : > { %1134 = vmatprep.subr.bf16.mxu0 %v1567_v36 }
 0x102   : > { %1135 = vmatpush3.bf16.msra.mxu0 %v1299_v43 }
 0x1b4   : > { %v1105_v44 = vpop.f32.mrb[0].mxu1 }
 0x1b5   : > { %v1106_v45 = vpop.f32.mrb[1].mxu1 }
 0x1b6   : > { %v1107_v46 = vadd.f32 %v1106_v45, %v1105_v44  ;;  %v1108_v47 = vpop.f32.mrb[2].mxu1 }
 0x1b7   : > { %v1109_v48 = vpop.f32.mrb[3].mxu1 }
 0x1b8   : > { %v1053_v49 = vmul.f32 -1.442695, %v1107_v46  ;;  %v1083_v52 = vpop.f32.mrb[0].mxu0 }
 0x1b9   : > { %v1084_v53 = vpop.f32.mrb[1].mxu0 }
 0x1ba   : > { %1300 = vpow2.f32 %v1053_v49  ;;  %v1085_v54 = vadd.f32 %v1084_v53, %v1083_v52  ;;  %v1086_v55 = vpop.f32.mrb[2].mxu0 }
 0x1bb   : > { %v1087_v56 = vpop.f32.mrb[3].mxu0 }
 0x1bc   : > { %v546_v60 = vadd.f32 %v1085_v54, %v1018_v59 }
 0x1be   : > { %v830_v61 = vrot.slane %v546_v60, 7 }
 0x1c4   : > { %v1301_v50 = vpop.eup %1300 }
 0x1c5   : > { %v722_v51 = vadd.f32 1.0, %v1301_v50 }
 0x1c7   : > { %1302 = vrcp.f32 %v722_v51 }
 0x1d1   : > { %v1303_v57 = vpop.eup %1302 }
 0x1d2   : > { %v725_v58 = vpack.c.bf16 %v1303_v57, %v1303_v57 }
 0x1d4   : > { %1137 = vmatmul.mubr.bf16.vlgmr.msra.gmra.mrb[4].mxu0 %v725_v58 }
 0x2a7   : > { %v824_v62 = vpop.f32.mrb[4].mxu0 }
 0x2a8   : > { %v831_v0 = vmul.f32 %v830_v61, %v824_v62  ;;  %v832_v1 = vsub.f32 1.0, %v824_v62  ;;  %v1138_v2 = vpop.f32.mrb[5].mxu0  ;;  %v838_v5 = vmul.f32 %v837_v63, %v824_v62 }
 0x2a9   : > { %v827_v3 = vpop.f32.mrb[6].mxu0 }
 0x2aa   : > { %v833_v4 = vmul.f32 %v832_v1, %v546_v60  ;;  %v1139_v6 = vpop.f32.mrb[7].mxu0 }
 0x2ac   : > { %v834_v7 = vadd.f32 %v833_v4, %v831_v0  ;;  %v839_v8 = vadd.f32 %v838_v5, %v833_v4 }
 0x2ae   : > { %v835_v9 = vpack.c.bf16 %v834_v7, %v834_v7  ;;  %v840_v10 = vpack.c.bf16 %v839_v8, %v839_v8 }
 0x2b0   : > { %836 = vst [vmem:[%s366_s18] sm:$0xf] %v835_v9 }
 0x2b7   : > { %v844_v11 = vld [vmem:[%s366_s18] sm:$0x1] }
 0x2b8   : > { %v845_v12 = vsel %vm843_vm3, %v840_v10, %v844_v11 }
 0x2b9   : > { %846 = vst [vmem:[%s366_s18] sm:$0x1] %v845_v12 }
 0x2ba   : > { %1461 = shalt.err (!%p1458_p7)
}
 0x2bb   : > { %s1462_s30 = scalar_lea.hbm %s1907_s13, 64  ;;  %s1466_s7 = scalar_lea.hbm %s2002_s2, 256 }
 0x2bc   : > { %p1463_p0 = scmp.ne.s32.totalorder %s1907_s13, %s1462_s30  ;;  %p1467_p11 = scmp.lt.u32.totalorder %s1907_s13, %s2002_s2 }
 0x2bd   : > { %p1468_p1 = scmp.lt.u32.totalorder %s1466_s7, %s1462_s30  ;;  %p1470_p8 = scmp.lt.u32.totalorder %s1462_s30, %s1907_s13 }
 0x2be   : > { %p1464_p13 = pnand %p1463_p0, %p1776_p3 }
 0x2bf   : > { %p1469_p4 = por %p1468_p1, %p1467_p11 }
 0x2c0   : > { %p1465_p9 = pneg %p1464_p13 }
 0x2c1   : > { %p1471_p12 = por %p1470_p8, %p1469_p4 }
 0x2c3   : > { %p1472_p2 = pnand %p1471_p12, %p1465_p9 }
 0x2c5   : > { %1475 = shalt.err (!%p1472_p2)
}
 0x2c6   : > { %1156 = dma.vmem_to_hbm [thread:$0]  (%p1776_p3), %s1909_s21, 64, %s1907_s13, %s848_s25  }
 0x2c7 PF: > { %s2003_s24 = sld [smem:[#allocation17_spill]]  ;;  %s2004_s18 = sld [smem:[#allocation19_spill]] }
 0x2c8   : > { %p1186_p6 = scmp.ge.s32.totalorder %s1558_s28, 2 }
 0x2cd   : > { %s875_s19 = sand.u32 1, %s2003_s24   ;;  %p2005_p10 = scmp.ne.s32.totalorder %s2004_s18, 0 }
 0x2ce   : > { %s876_s20 = scalar_lea.sflag [#allocation4], %s875_s19 }
 0x2cf   : > { %p1176_p5 = pnand %p1186_p6, %p2005_p10 }
 0x2d1   : > { %1525 = dma.done.wait (!%p1176_p5), %s876_s20, 64  }
 0x2d2   : > { %1527 = vsyncadd (!%p1176_p5), %s876_s20, 4294967232  ;;  %s26_s28 = sadd.s32 1, %s1558_s28   ;;  %s2006_s8 = sld [smem:[#allocation20_spill]] }
 0x2d3   : > { %p23_p7 = scmp.ge.s32.totalorder %s26_s28, 6   ;;  %s2007_s21 = smov %s1534_s22 }
 0x2d4   : > { %s2008_s22 = smov %s1538_s23  ;;  %s2009_s23 = smov %s1796_s14 }
 0x2d5   : > { %s2010_s24 = smov %s1550_s26  ;;  %s2011_s25 = smov %s1554_s27 }
 0x2d6   : > { %s2012_s26 = smov %s2015_s12  ;;  %25 = sbr.rel (!%p23_p7) target bundleno = 15 (0xf), region = 114 }
 0x2d8   : > { %s2013_s27 = smov %s2006_s8 }
 0x2dd   :  { %881 = vsyncpa [#allocation3], 1 }
 0x2de   :  { %883 = vsyncpa [#allocation3 + $0x1], 1 }
 0x2df   :  { %884 = vsyncpa [#allocation6], 1 }
 0x2e0   :  { %886 = vsyncpa [#allocation6 + $0x1], 1 }
 0x2e1   :  { %887 = vsyncpa [#allocation9], 1 }
 0x2e2   :  { %888 = vsyncpa [#allocation4], 1 }
 0x2e3   :  { %890 = vsyncpa [#allocation4 + $0x1], 1 }

</bundles_post_ra>
